<compile_context>
chip_gen: v7x
topology: tpu7x:2x2x1
jax: 0.10.0
libtpu: 0.0.40
codegen_flags: <defaults>
</compile_context>

<pallas_src>
import functools

import jax
import jax.numpy as jnp
from jax import lax
from jax.experimental import pallas as pl
from jax.experimental.pallas import tpu as pltpu


def _conv2d_relu_kernel(x_ref, w_ref, b_ref, mask_ref, o_ref, acc_ref,
                        *, KH, KW, H, W):
    """One grid step = (batch element) x (Cout tile) x (Cin tile).

    x_ref:    (cin_t, Lpad)        padded, spatially-flattened input tile
    w_ref:    (KH*KW*cin_t, cout_t) weights, rows ordered (tap, ci_local)
    b_ref:    (cout_t, 1)          bias (resident)
    mask_ref: (KW, M)              {0,1} column-validity masks (resident)
    o_ref:    (cout_t, M)          lane-dense NCHW output tile, M = H*W
    acc_ref:  (M, cout_t) f32      accumulator across the Cin grid axis
    """
    kc = pl.program_id(2)

    @pl.when(kc == 0)
    def _():
        acc_ref[...] = jnp.zeros_like(acc_ref)

    cin_t = x_ref.shape[0]
    M = H * W
    pw_lo = (KW - 1) // 2

    acc = acc_ref[...]
    for kh in range(KH):
        for kw in range(KW):
            t = kh * KW + kw
            s = kh * W + kw
            # In-kernel im2col: a CONTIGUOUS lane slice of the resident tile
            # (no reshape, no HBM round trip).
            tap = x_ref[:, s:s + M]                              # (cin_t, M)
            if kw != pw_lo:
                # Zero the columns whose window crosses the W boundary.
                tap = tap * mask_ref[kw:kw + 1, :]
            wk = w_ref[t * cin_t:(t + 1) * cin_t, :]             # (cin_t, cout_t)
            # Stream the long spatial dim through the MXU; the small weight
            # block is the stationary operand (the tap transpose is XLU work).
            acc = acc + jnp.dot(tap.T, wk,
                                preferred_element_type=jnp.float32)
    acc_ref[...] = acc

    @pl.when(kc == pl.num_programs(2) - 1)
    def _():
        # One XLU transpose, bias (Cout,1) lane-broadcast + ReLU (VPU), then a
        # lane-dense (cout_t, M) store.
        out = acc.T + b_ref[...]
        o_ref[...] = jnp.maximum(out, 0.0).astype(o_ref.dtype)


def _pick_cout_tile(cout):
    """Full Cout when small; otherwise a 128/256-wide tile to bound the
    resident weights / output tile and add a parallel grid axis."""
    if cout <= 256:
        return cout
    for cand in (256, 128):
        if cout % cand == 0:
            return cand
    return cout


def _pick_cin_tile(cin, lpad, itemsize, budget_bytes=8 << 20):
    """Largest channel tile whose (cin_t, Lpad) input slab fits the budget.
    Proper divisors must be multiples of 8 (sublane constraint)."""
    if cin * lpad * itemsize <= budget_bytes:
        return cin
    for d in range(cin, 0, -1):
        if cin % d == 0 and d % 8 == 0 and d * lpad * itemsize <= budget_bytes:
            return d
    return cin


def _vmem_limit_bytes(per_step_bytes):
    """Per-step need + headroom, clamped against physical VMEM (64 MiB/TC on
    v7x, 128 MiB on v5e/v6e); at least the 16 MiB v5e default scoped limit."""
    try:
        info = pltpu.get_tpu_info()
        physical = int(getattr(info, "vmem_capacity_bytes", 64 << 20))
    except Exception:
        physical = 64 << 20
    want = int(per_step_bytes) + (4 << 20)
    return int(min(max(want, 16 << 20), (physical * 3) // 4))


def conv2d_same_relu(x_nchw, weight_oihw, bias, *, compute_dtype=None,
                     out_dtype=None):
    """F.conv2d(x, w, b, stride=1, padding='same') followed by ReLU (NCHW)."""
    N, Cin, H, W = x_nchw.shape
    Cout, Cin_w, KH, KW = weight_oihw.shape
    assert Cin == Cin_w
    if compute_dtype is None:
        compute_dtype = x_nchw.dtype
    if out_dtype is None:
        out_dtype = x_nchw.dtype

    # 'same' padding split for stride=1 (extra on the high side for even
    # kernels), matching PyTorch / lax SAME.
    ph_lo = (KH - 1) // 2
    ph_hi = (KH - 1) - ph_lo
    pw_lo = (KW - 1) // 2
    pw_hi = (KW - 1) - pw_lo

    M = H * W
    # Row-major flattened spatial frame: padding H rows == padding the flat
    # dim by whole rows, so ONE pad produces the frame in which every (kh,kw)
    # tap is the contiguous slice [kh*W + kw : kh*W + kw + M].
    Lpad = M + (KH - 1) * W + (KW - 1)
    itemsize = jnp.dtype(compute_dtype).itemsize

    # Cast BEFORE the pad so the (only) HBM-materialized slab is already
    # narrow; the reshape is free (row-major metadata only).
    xflat = x_nchw.reshape(N, Cin, M).astype(compute_dtype)
    xpad = jnp.pad(xflat, ((0, 0), (0, 0),
                           (ph_lo * W + pw_lo, ph_hi * W + pw_hi)))

    cout_t = _pick_cout_tile(Cout)
    cin_t = _pick_cin_tile(Cin, Lpad, itemsize)
    kt = cin_t * KH * KW

    # Weights (O,I,KH,KW) -> rows ordered (cin_tile, tap, ci_local) so that a
    # Cin grid tile is a contiguous row block AND each tap's (cin_t, cout_t)
    # slice inside the kernel is a contiguous static slice.
    w_flat = (jnp.transpose(weight_oihw, (1, 2, 3, 0))        # (Cin,KH,KW,Cout)
              .reshape(Cin // cin_t, cin_t, KH * KW, Cout)
              .transpose(0, 2, 1, 3)                          # (tiles,tap,ci,Cout)
              .reshape(Cin * KH * KW, Cout)
              .astype(compute_dtype))
    b = bias.reshape(Cout, 1).astype(jnp.float32)

    # Per-kw {0,1} column-validity masks (zero the W-boundary row wraps).
    col = jnp.arange(M, dtype=jnp.int32) % W
    mask_rows = [((col + (kw - pw_lo) >= 0) & (col + (kw - pw_lo) < W))
                 for kw in range(KW)]
    mask_arr = jnp.stack(mask_rows, axis=0).astype(compute_dtype)   # (KW, M)

    grid = (N, Cout // cout_t, Cin // cin_t)   # reduction (Cin) axis last

    per_step = (2 * cin_t * Lpad * itemsize                       # input tiles
                + 2 * cout_t * M * jnp.dtype(out_dtype).itemsize  # output tiles
                + 2 * kt * cout_t * itemsize                      # weight tiles
                + M * cout_t * 4                                  # f32 accumulator
                + (KW * M + cout_t * 128) * 4)                    # masks + bias
    vmem_limit = _vmem_limit_bytes(per_step)

    kernel = functools.partial(_conv2d_relu_kernel, KH=KH, KW=KW, H=H, W=W)

    out = pl.pallas_call(
        kernel,
        out_shape=jax.ShapeDtypeStruct((N, Cout, M), out_dtype),
        grid=grid,
        in_specs=[
            pl.BlockSpec((None, cin_t, Lpad), lambda n, c, k: (n, k, 0)),
            pl.BlockSpec((kt, cout_t), lambda n, c, k: (k, c)),
            pl.BlockSpec((cout_t, 1), lambda n, c, k: (c, 0)),
            pl.BlockSpec((KW, M), lambda n, c, k: (0, 0)),
        ],
        out_specs=pl.BlockSpec((None, cout_t, M), lambda n, c, k: (n, c, 0)),
        scratch_shapes=[pltpu.VMEM((M, cout_t), jnp.float32)],
        compiler_params=pltpu.CompilerParams(
            dimension_semantics=("parallel", "parallel", "arbitrary"),
            vmem_limit_bytes=vmem_limit),
    )(xpad, w_flat, b, mask_arr)

    # NCHW comes straight out of the kernel; this reshape is free.
    return out.reshape(N, Cout, H, W)


def init_conv2d_params(key, in_channels, out_channels, kernel_size):
    """Deterministic xavier_uniform weight (OIHW) and zero bias, like the module."""
    if isinstance(kernel_size, int):
        kernel_size = (kernel_size, kernel_size)
    kh, kw = kernel_size
    fan_in = in_channels * kh * kw
    fan_out = out_channels * kh * kw
    bound = (6.0 / (fan_in + fan_out)) ** 0.5
    weight = jax.random.uniform(
        key, (out_channels, in_channels, kh, kw),
        minval=-bound, maxval=bound, dtype=jnp.float32)
    bias = jnp.zeros((out_channels,), jnp.float32)
    return weight, bias


if __name__ == "__main__":
    key = jax.random.PRNGKey(0)
    k_x, k_w = jax.random.split(key)

    # Small shapes consistent with the module's forward (NCHW input).
    N, Cin, H, W = 2, 4, 16, 16
    Cout, Ksz = 8, 3

    x = jax.random.normal(k_x, (N, Cin, H, W), dtype=jnp.float32)
    weight, bias = init_conv2d_params(k_w, Cin, Cout, Ksz)

    # f32 compute path (tight check).
    out = conv2d_same_relu(x, weight, bias)
    out = jax.block_until_ready(out)

    ref = lax.conv_general_dilated(
        x, weight, window_strides=(1, 1), padding="SAME",
        dimension_numbers=("NCHW", "OIHW", "NCHW"))
    ref = jnp.maximum(ref + bias[None, :, None, None], 0.0)

    assert out.shape == (N, Cout, H, W)
    assert jnp.allclose(out, ref, atol=1e-4, rtol=1e-4)

    # bf16-to-MXU path (cast before the pad; f32 accumulation in the kernel).
    out_bf16 = conv2d_same_relu(x, weight, bias, compute_dtype=jnp.bfloat16)
    out_bf16 = jax.block_until_ready(out_bf16)
    xb = x.astype(jnp.bfloat16).astype(jnp.float32)
    wb = weight.astype(jnp.bfloat16).astype(jnp.float32)
    ref_b = lax.conv_general_dilated(
        xb, wb, window_strides=(1, 1), padding="SAME",
        dimension_numbers=("NCHW", "OIHW", "NCHW"))
    ref_b = jnp.maximum(ref_b + bias[None, :, None, None], 0.0)
    assert jnp.allclose(out_bf16, ref_b, atol=5e-3, rtol=5e-3)

    print("KERNEL_OK")
</pallas_src>

<mosaic_0001>
module attributes {stable_mosaic.version = 11 : i64} {
  func.func @_conv2d_relu_kernel(%arg0: i32, %arg1: i32, %arg2: i32, %arg3: memref<1x4x290xf32, #tpu.memory_space<vmem>>, %arg4: memref<36x8xf32, #tpu.memory_space<vmem>>, %arg5: memref<8x1xf32, #tpu.memory_space<vmem>>, %arg6: memref<3x256xf32, #tpu.memory_space<vmem>>, %arg7: memref<1x8x256xf32, #tpu.memory_space<vmem>>, %arg8: memref<256x8xf32, #tpu.memory_space<vmem>>) attributes {dimension_semantics = [#tpu.dimension_semantics<parallel>, #tpu.dimension_semantics<parallel>, #tpu.dimension_semantics<arbitrary>], iteration_bounds = array<i64: 2, 1, 1>, scalar_prefetch = 0 : i64, scratch_operands = 1 : i64, tpu.core_type = #tpu.core_type<tc>, window_params = [{transform_indices = @transform_0, window_bounds = array<i64: 1, 4, 290>}, {transform_indices = @transform_1, window_bounds = array<i64: 36, 8>}, {transform_indices = @transform_2, window_bounds = array<i64: 8, 1>}, {pipeline_mode = #tpu.pipeline_mode<synchronous>, transform_indices = @transform_3, window_bounds = array<i64: 3, 256>}, {transform_indices = @transform_4, window_bounds = array<i64: 1, 8, 256>}]} {
    %c0_i32 = arith.constant 0 : i32
    %0 = arith.cmpi eq, %arg2, %c0_i32 : i32
    %1 = arith.extui %0 : i1 to i32
    %c0_i32_0 = arith.constant 0 : i32
    %2 = arith.cmpi ne, %1, %c0_i32_0 : i32
    scf.if %2 {
      %cst_57 = arith.constant 0.000000e+00 : f32
      %80 = vector.broadcast %cst_57 : f32 to vector<256x8xf32>
      %c0_58 = arith.constant 0 : index
      %c0_59 = arith.constant 0 : index
      %81 = vector.load %arg8[%c0_58, %c0_59] : memref<256x8xf32, #tpu.memory_space<vmem>>, vector<256x8xf32>
      tpu.vector_store %arg8[%c0_58, %c0_59], %80 {strides = array<i32>} : memref<256x8xf32, #tpu.memory_space<vmem>>, vector<256x8xf32>,
    } else {
    }
    %c0 = arith.constant 0 : index
    %c0_1 = arith.constant 0 : index
    %3 = vector.load %arg8[%c0, %c0_1] : memref<256x8xf32, #tpu.memory_space<vmem>>, vector<256x8xf32>
    %c0_2 = arith.constant 0 : index
    %c0_3 = arith.constant 0 : index
    %c0_4 = arith.constant 0 : index
    %4 = vector.load %arg3[%c0_2, %c0_3, %c0_4] : memref<1x4x290xf32, #tpu.memory_space<vmem>>, vector<1x4x256xf32>
    %5 = vector.shape_cast %4 : vector<1x4x256xf32> to vector<4x256xf32>
    %c0_5 = arith.constant 0 : index
    %c0_6 = arith.constant 0 : index
    %6 = vector.load %arg6[%c0_5, %c0_6] : memref<3x256xf32, #tpu.memory_space<vmem>>, vector<1x256xf32>
    %7 = vector.broadcast %6 : vector<1x256xf32> to vector<4x256xf32>
    %8 = arith.mulf %5, %7 : vector<4x256xf32>
    %c0_7 = arith.constant 0 : index
    %c0_8 = arith.constant 0 : index
    %9 = vector.load %arg4[%c0_7, %c0_8] : memref<36x8xf32, #tpu.memory_space<vmem>>, vector<4x8xf32>
    %10 = tpu.transpose %8, [1, 0] : vector<4x256xf32> -> vector<256x4xf32>
    %cst = arith.constant dense<0.000000e+00> : vector<256x8xf32>
    %11 = tpu.matmul %10, %9, %cst {dimension_numbers = #tpu.dot_dimension_numbers<[1], [0], [0], [1], [0, 0, 1, 1], [], []>} : vector<256x4xf32>, vector<4x8xf32>, vector<256x8xf32> -> vector<256x8xf32>
    %12 = arith.addf %3, %11 : vector<256x8xf32>
    %c0_9 = arith.constant 0 : index
    %c0_10 = arith.constant 0 : index
    %c1 = arith.constant 1 : index
    %13 = vector.load %arg3[%c0_9, %c0_10, %c1] : memref<1x4x290xf32, #tpu.memory_space<vmem>>, vector<1x4x256xf32>
    %14 = vector.shape_cast %13 : vector<1x4x256xf32> to vector<4x256xf32>
    %c4 = arith.constant 4 : index
    %c0_11 = arith.constant 0 : index
    %15 = vector.load %arg4[%c4, %c0_11] : memref<36x8xf32, #tpu.memory_space<vmem>>, vector<4x8xf32>
    %16 = tpu.transpose %14, [1, 0] : vector<4x256xf32> -> vector<256x4xf32>
    %cst_12 = arith.constant dense<0.000000e+00> : vector<256x8xf32>
    %17 = tpu.matmul %16, %15, %cst_12 {dimension_numbers = #tpu.dot_dimension_numbers<[1], [0], [0], [1], [0, 0, 1, 1], [], []>} : vector<256x4xf32>, vector<4x8xf32>, vector<256x8xf32> -> vector<256x8xf32>
    %18 = arith.addf %12, %17 : vector<256x8xf32>
    %c0_13 = arith.constant 0 : index
    %c0_14 = arith.constant 0 : index
    %c2 = arith.constant 2 : index
    %19 = vector.load %arg3[%c0_13, %c0_14, %c2] : memref<1x4x290xf32, #tpu.memory_space<vmem>>, vector<1x4x256xf32>
    %20 = vector.shape_cast %19 : vector<1x4x256xf32> to vector<4x256xf32>
    %c2_15 = arith.constant 2 : index
    %c0_16 = arith.constant 0 : index
    %21 = vector.load %arg6[%c2_15, %c0_16] : memref<3x256xf32, #tpu.memory_space<vmem>>, vector<1x256xf32>
    %22 = vector.broadcast %21 : vector<1x256xf32> to vector<4x256xf32>
    %23 = arith.mulf %20, %22 : vector<4x256xf32>
    %c8 = arith.constant 8 : index
    %c0_17 = arith.constant 0 : index
    %24 = vector.load %arg4[%c8, %c0_17] : memref<36x8xf32, #tpu.memory_space<vmem>>, vector<4x8xf32>
    %25 = tpu.transpose %23, [1, 0] : vector<4x256xf32> -> vector<256x4xf32>
    %cst_18 = arith.constant dense<0.000000e+00> : vector<256x8xf32>
    %26 = tpu.matmul %25, %24, %cst_18 {dimension_numbers = #tpu.dot_dimension_numbers<[1], [0], [0], [1], [0, 0, 1, 1], [], []>} : vector<256x4xf32>, vector<4x8xf32>, vector<256x8xf32> -> vector<256x8xf32>
    %27 = arith.addf %18, %26 : vector<256x8xf32>
    %c0_19 = arith.constant 0 : index
    %c0_20 = arith.constant 0 : index
    %c16 = arith.constant 16 : index
    %28 = vector.load %arg3[%c0_19, %c0_20, %c16] : memref<1x4x290xf32, #tpu.memory_space<vmem>>, vector<1x4x256xf32>
    %29 = vector.shape_cast %28 : vector<1x4x256xf32> to vector<4x256xf32>
    %c0_21 = arith.constant 0 : index
    %c0_22 = arith.constant 0 : index
    %30 = vector.load %arg6[%c0_21, %c0_22] : memref<3x256xf32, #tpu.memory_space<vmem>>, vector<1x256xf32>
    %31 = vector.broadcast %30 : vector<1x256xf32> to vector<4x256xf32>
    %32 = arith.mulf %29, %31 : vector<4x256xf32>
    %c12 = arith.constant 12 : index
    %c0_23 = arith.constant 0 : index
    %33 = vector.load %arg4[%c12, %c0_23] : memref<36x8xf32, #tpu.memory_space<vmem>>, vector<4x8xf32>
    %34 = tpu.transpose %32, [1, 0] : vector<4x256xf32> -> vector<256x4xf32>
    %cst_24 = arith.constant dense<0.000000e+00> : vector<256x8xf32>
    %35 = tpu.matmul %34, %33, %cst_24 {dimension_numbers = #tpu.dot_dimension_numbers<[1], [0], [0], [1], [0, 0, 1, 1], [], []>} : vector<256x4xf32>, vector<4x8xf32>, vector<256x8xf32> -> vector<256x8xf32>
    %36 = arith.addf %27, %35 : vector<256x8xf32>
    %c0_25 = arith.constant 0 : index
    %c0_26 = arith.constant 0 : index
    %c17 = arith.constant 17 : index
    %37 = vector.load %arg3[%c0_25, %c0_26, %c17] : memref<1x4x290xf32, #tpu.memory_space<vmem>>, vector<1x4x256xf32>
    %38 = vector.shape_cast %37 : vector<1x4x256xf32> to vector<4x256xf32>
    %c16_27 = arith.constant 16 : index
    %c0_28 = arith.constant 0 : index
    %39 = vector.load %arg4[%c16_27, %c0_28] : memref<36x8xf32, #tpu.memory_space<vmem>>, vector<4x8xf32>
    %40 = tpu.transpose %38, [1, 0] : vector<4x256xf32> -> vector<256x4xf32>
    %cst_29 = arith.constant dense<0.000000e+00> : vector<256x8xf32>
    %41 = tpu.matmul %40, %39, %cst_29 {dimension_numbers = #tpu.dot_dimension_numbers<[1], [0], [0], [1], [0, 0, 1, 1], [], []>} : vector<256x4xf32>, vector<4x8xf32>, vector<256x8xf32> -> vector<256x8xf32>
    %42 = arith.addf %36, %41 : vector<256x8xf32>
    %c0_30 = arith.constant 0 : index
    %c0_31 = arith.constant 0 : index
    %c18 = arith.constant 18 : index
    %43 = vector.load %arg3[%c0_30, %c0_31, %c18] : memref<1x4x290xf32, #tpu.memory_space<vmem>>, vector<1x4x256xf32>
    %44 = vector.shape_cast %43 : vector<1x4x256xf32> to vector<4x256xf32>
    %c2_32 = arith.constant 2 : index
    %c0_33 = arith.constant 0 : index
    %45 = vector.load %arg6[%c2_32, %c0_33] : memref<3x256xf32, #tpu.memory_space<vmem>>, vector<1x256xf32>
    %46 = vector.broadcast %45 : vector<1x256xf32> to vector<4x256xf32>
    %47 = arith.mulf %44, %46 : vector<4x256xf32>
    %c20 = arith.constant 20 : index
    %c0_34 = arith.constant 0 : index
    %48 = vector.load %arg4[%c20, %c0_34] : memref<36x8xf32, #tpu.memory_space<vmem>>, vector<4x8xf32>
    %49 = tpu.transpose %47, [1, 0] : vector<4x256xf32> -> vector<256x4xf32>
    %cst_35 = arith.constant dense<0.000000e+00> : vector<256x8xf32>
    %50 = tpu.matmul %49, %48, %cst_35 {dimension_numbers = #tpu.dot_dimension_numbers<[1], [0], [0], [1], [0, 0, 1, 1], [], []>} : vector<256x4xf32>, vector<4x8xf32>, vector<256x8xf32> -> vector<256x8xf32>
    %51 = arith.addf %42, %50 : vector<256x8xf32>
    %c0_36 = arith.constant 0 : index
    %c0_37 = arith.constant 0 : index
    %c32 = arith.constant 32 : index
    %52 = vector.load %arg3[%c0_36, %c0_37, %c32] : memref<1x4x290xf32, #tpu.memory_space<vmem>>, vector<1x4x256xf32>
    %53 = vector.shape_cast %52 : vector<1x4x256xf32> to vector<4x256xf32>
    %c0_38 = arith.constant 0 : index
    %c0_39 = arith.constant 0 : index
    %54 = vector.load %arg6[%c0_38, %c0_39] : memref<3x256xf32, #tpu.memory_space<vmem>>, vector<1x256xf32>
    %55 = vector.broadcast %54 : vector<1x256xf32> to vector<4x256xf32>
    %56 = arith.mulf %53, %55 : vector<4x256xf32>
    %c24 = arith.constant 24 : index
    %c0_40 = arith.constant 0 : index
    %57 = vector.load %arg4[%c24, %c0_40] : memref<36x8xf32, #tpu.memory_space<vmem>>, vector<4x8xf32>
    %58 = tpu.transpose %56, [1, 0] : vector<4x256xf32> -> vector<256x4xf32>
    %cst_41 = arith.constant dense<0.000000e+00> : vector<256x8xf32>
    %59 = tpu.matmul %58, %57, %cst_41 {dimension_numbers = #tpu.dot_dimension_numbers<[1], [0], [0], [1], [0, 0, 1, 1], [], []>} : vector<256x4xf32>, vector<4x8xf32>, vector<256x8xf32> -> vector<256x8xf32>
    %60 = arith.addf %51, %59 : vector<256x8xf32>
    %c0_42 = arith.constant 0 : index
    %c0_43 = arith.constant 0 : index
    %c33 = arith.constant 33 : index
    %61 = vector.load %arg3[%c0_42, %c0_43, %c33] : memref<1x4x290xf32, #tpu.memory_space<vmem>>, vector<1x4x256xf32>
    %62 = vector.shape_cast %61 : vector<1x4x256xf32> to vector<4x256xf32>
    %c28 = arith.constant 28 : index
    %c0_44 = arith.constant 0 : index
    %63 = vector.load %arg4[%c28, %c0_44] : memref<36x8xf32, #tpu.memory_space<vmem>>, vector<4x8xf32>
    %64 = tpu.transpose %62, [1, 0] : vector<4x256xf32> -> vector<256x4xf32>
    %cst_45 = arith.constant dense<0.000000e+00> : vector<256x8xf32>
    %65 = tpu.matmul %64, %63, %cst_45 {dimension_numbers = #tpu.dot_dimension_numbers<[1], [0], [0], [1], [0, 0, 1, 1], [], []>} : vector<256x4xf32>, vector<4x8xf32>, vector<256x8xf32> -> vector<256x8xf32>
    %66 = arith.addf %60, %65 : vector<256x8xf32>
    %c0_46 = arith.constant 0 : index
    %c0_47 = arith.constant 0 : index
    %c34 = arith.constant 34 : index
    %67 = vector.load %arg3[%c0_46, %c0_47, %c34] : memref<1x4x290xf32, #tpu.memory_space<vmem>>, vector<1x4x256xf32>
    %68 = vector.shape_cast %67 : vector<1x4x256xf32> to vector<4x256xf32>
    %c2_48 = arith.constant 2 : index
    %c0_49 = arith.constant 0 : index
    %69 = vector.load %arg6[%c2_48, %c0_49] : memref<3x256xf32, #tpu.memory_space<vmem>>, vector<1x256xf32>
    %70 = vector.broadcast %69 : vector<1x256xf32> to vector<4x256xf32>
    %71 = arith.mulf %68, %70 : vector<4x256xf32>
    %c32_50 = arith.constant 32 : index
    %c0_51 = arith.constant 0 : index
    %72 = vector.load %arg4[%c32_50, %c0_51] : memref<36x8xf32, #tpu.memory_space<vmem>>, vector<4x8xf32>
    %73 = tpu.transpose %71, [1, 0] : vector<4x256xf32> -> vector<256x4xf32>
    %cst_52 = arith.constant dense<0.000000e+00> : vector<256x8xf32>
    %74 = tpu.matmul %73, %72, %cst_52 {dimension_numbers = #tpu.dot_dimension_numbers<[1], [0], [0], [1], [0, 0, 1, 1], [], []>} : vector<256x4xf32>, vector<4x8xf32>, vector<256x8xf32> -> vector<256x8xf32>
    %75 = arith.addf %66, %74 : vector<256x8xf32>
    %c0_53 = arith.constant 0 : index
    %c0_54 = arith.constant 0 : index
    %76 = vector.load %arg8[%c0_53, %c0_54] : memref<256x8xf32, #tpu.memory_space<vmem>>, vector<256x8xf32>
    tpu.vector_store %arg8[%c0_53, %c0_54], %75 {strides = array<i32>} : memref<256x8xf32, #tpu.memory_space<vmem>>, vector<256x8xf32>,
    %c0_i32_55 = arith.constant 0 : i32
    %77 = arith.cmpi eq, %arg2, %c0_i32_55 : i32
    %78 = arith.extui %77 : i1 to i32
    %c0_i32_56 = arith.constant 0 : i32
    %79 = arith.cmpi ne, %78, %c0_i32_56 : i32
    scf.if %79 {
      %80 = tpu.transpose %75, [1, 0] : vector<256x8xf32> -> vector<8x256xf32>
      %c0_57 = arith.constant 0 : index
      %c0_58 = arith.constant 0 : index
      %81 = vector.load %arg5[%c0_57, %c0_58] : memref<8x1xf32, #tpu.memory_space<vmem>>, vector<8x1xf32>
      %82 = vector.broadcast %81 : vector<8x1xf32> to vector<8x256xf32>
      %83 = arith.addf %80, %82 : vector<8x256xf32>
      %cst_59 = arith.constant 0.000000e+00 : f32
      %84 = vector.broadcast %cst_59 : f32 to vector<8x256xf32>
      %85 = arith.maximumf %83, %84 : vector<8x256xf32>
      %c0_60 = arith.constant 0 : index
      %c0_61 = arith.constant 0 : index
      %c0_62 = arith.constant 0 : index
      %86 = vector.load %arg7[%c0_60, %c0_61, %c0_62] : memref<1x8x256xf32, #tpu.memory_space<vmem>>, vector<1x8x256xf32>
      %87 = vector.shape_cast %86 : vector<1x8x256xf32> to vector<8x256xf32>
      %88 = vector.shape_cast %85 : vector<8x256xf32> to vector<1x8x256xf32>
      tpu.vector_store %arg7[%c0_60, %c0_61, %c0_62], %88 {strides = array<i32>} : memref<1x8x256xf32, #tpu.memory_space<vmem>>, vector<1x8x256xf32>,
    } else {
    }
    return
  }
  func.func @transform_0(%arg0: i32, %arg1: i32, %arg2: i32) -> (i32, i32, i32) {
    %c0_i32 = arith.constant 0 : i32
    %c0_i32_0 = arith.constant 0 : i32
    return %arg0, %arg2, %c0_i32 : i32, i32, i32
  }
  func.func @transform_1(%arg0: i32, %arg1: i32, %arg2: i32) -> (i32, i32) {
    %c0_i32 = arith.constant 0 : i32
    return %arg2, %arg1 : i32, i32
  }
  func.func @transform_2(%arg0: i32, %arg1: i32, %arg2: i32) -> (i32, i32) {
    %c0_i32 = arith.constant 0 : i32
    %c0_i32_0 = arith.constant 0 : i32
    return %arg1, %c0_i32 : i32, i32
  }
  func.func @transform_3(%arg0: i32, %arg1: i32, %arg2: i32) -> (i32, i32) {
    %c0_i32 = arith.constant 0 : i32
    %c0_i32_0 = arith.constant 0 : i32
    %c0_i32_1 = arith.constant 0 : i32
    return %c0_i32, %c0_i32_0 : i32, i32
  }
  func.func @transform_4(%arg0: i32, %arg1: i32, %arg2: i32) -> (i32, i32, i32) {
    %c0_i32 = arith.constant 0 : i32
    %c0_i32_0 = arith.constant 0 : i32
    return %arg0, %arg1, %c0_i32 : i32, i32, i32
  }
}

</mosaic_0001>

<bundles_post_ra>
// kernel: tpu_custom_call.1
= control target key start
LH: loop header
LB: loop body
LE: loop exit
PB: predicated region body
PF: predicated region fallthrough
CT: control target
= control target key end

     0   :  { %9 = vsyncpa [#allocation4], 0  ;;  %s7071_s0 = inlined_call_operand.vmem [shape: f32[2,4,290], index: 0, kind: input, shape index: {}]   ;;  %s7072_s1 = inlined_call_operand.vmem [shape: f32[36,8], index: 1, kind: input, shape index: {}]   ;;  %s7073_s2 = inlined_call_operand.vmem [shape: f32[8,1], index: 2, kind: input, shape index: {}]   ;;  %s7074_s3 = inlined_call_operand.vmem [shape: f32[3,256], index: 3, kind: input, shape index: {}]   ;;  %s7075_s4 = inlined_call_operand.hbm [shape: f32[2,8,256], index: 4, kind: output, shape index: {}]  }
   0x1   :  { %11 = vsyncpa [#allocation4 + $0x1], 0  ;;  %s6132_s15 = smov 0   ;;  %s6134_s16 = smov 0  }
   0x2   :  { %s6136_s17 = smov 0   ;;  %s6138_s18 = smov 0  }
   0x3   :  { %s6140_s19 = smov 0   ;;  %s6142_s20 = smov 0  }
   0x4 LB: > { %s4587_s21 = sadd.s32 4294967295, %s6089_s20   ;;  %s4588_s22 = sadd.s32 4294967294, %s6089_s20   ;;  %s6089_s20 = sphi %s6142_s20, %s17_s20   ;;  %s6085_s19 = sphi %s6140_s19, %s7082_s19   ;;  %s6081_s18 = sphi %s6138_s18, %s7081_s18   ;;  %s6077_s17 = sphi %s6136_s17, %s7080_s17   ;;  %s6073_s16 = sphi %s6134_s16, %s7079_s16   ;;  %s6069_s15 = sphi %s6132_s15, %s7078_s15  }
   0x5   : > { %s36_s23 = sadd.s32 1, %s6085_s19  ;;  %s148_s24 = sadd.s32 1, %s6077_s17 }
   0x6   : > { %p38_p0 = scmp.ge.s32.totalorder %s36_s23, 2  ;;  %p158_p1 = scmp.ne.s32.totalorder %s6077_s17, %s6073_s16 }
   0x7   : > { %p159_p2 = scmp.eq.s32.totalorder %s4587_s21, 1  ;;  %p164_p3 = scmp.ne.s32.totalorder %s6073_s16, %s6069_s15 }
   0x8   : > { %s7084_s23 = smov (%p38_p0, %s36_s23), 0  ;;  %p165_p5 = scmp.eq.s32.totalorder %s4588_s22, 1 }
   0x9   : > { %p6172_p4 = por %p159_p2, %p158_p1  ;;  %s143_s26 = ssub.s32 %s6085_s19, %s7084_s23 }
   0xa   : > { %p4593_p6 = scmp.ge.s32.totalorder %s6089_s20, 1  ;;  %p146_p7 = scmp.eq.s32.totalorder %s143_s26, 0 }
   0xb   : > { %p6179_p8 = por %p165_p5, %p164_p3  ;;  %p217_p9 = scmp.lt.s32.totalorder %s6089_s20, 3 }
   0xc   : > { %s6185_s28 = scalar_select %p146_p7, %s6077_s17, %s148_s24  }
   0xd   : > { %p218_p10 = pnand %p4593_p6, %p217_p9 }
   0xe   : > { %p259_p11 = scmp.lt.s32.totalorder (!%p218_p10), %s6081_s18, 1  ;;  %v353_v0 = vlaneseq (!%p218_p10)  ;;  %v4662_v2 = vld [vmem:[%s7074_s3 + $0x2] ss:$4 sm:$0x3] (!%p218_p10)  ;;  %s6091_s10 = smov (!%p218_p10), 127   ;;  %vm1244_vm0 = vcmask (!%p218_p10), 15360  }
   0xf   : > { %221 = sbr.rel (%p218_p10) target bundleno = 1615 (0x64f), region = 36  ;;  %v351_v10 = vld [vmem:[%s7074_s3] ss:$4 sm:$0x3] (!%p218_p10)  ;;  %s6092_s13 = smov (!%p218_p10), 2   ;;  %vm802_vm1 = vcmask (!%p218_p10), 1039360  }
  0x10   : > { %v354_v1 = vshrl.u32 (!%p218_p10), %v353_v0, 7  ;;  %s6093_s14 = smov (!%p218_p10), 16   ;;  %s6094_s21 = smov (!%p218_p10), 126   ;;  %vm1690_vm2 = vcmask (!%p218_p10), 130048   ;;  %vm1260_vm3 = vcmask (!%p218_p10), 1031168   ;;  %vm1706_vm4 = vcmask (!%p218_p10), 916480  }
  0x11   : > { %s6095_s22 = smov (!%p218_p10), 111   ;;  %s6096_s24 = smov (!%p218_p10), 112   ;;  %vm2573_vm5 = vcmask (!%p218_p10), 146432   ;;  %vm3019_vm6 = vcmask (!%p218_p10), 261120   ;;  %vm2589_vm7 = vcmask (!%p218_p10), 900096   ;;  %vm3035_vm8 = vcmask (!%p218_p10), 785408  }
  0x12   : > { %v355_v3 = vsub.s32 (!%p218_p10), 0, %v354_v1  ;;  %v359_v4 = vsub.s32 (!%p218_p10), 1, %v354_v1  ;;  %s6097_s26 = smov (!%p218_p10), 18   ;;  %s6099_s30 = smov (!%p218_p10), 110   ;;  %vm3902_vm9 = vcmask (!%p218_p10), 277504   ;;  %vm3472_vm10 = vcmask (!%p218_p10), 777216  }
  0x13   : > { %s6100_s5 = smov (!%p218_p10), 96   ;;  %s6102_s7 = smov (!%p218_p10), 95   ;;  %vm529_vm11 = vcmask (!%p218_p10), 1043456   ;;  %vm432_vm12 = vcmask (!%p218_p10), 31744   ;;  %vm2143_vm13 = vcmask (!%p218_p10), 908288   ;;  %vm3918_vm14 = vcmask (!%p218_p10), 769024  }
  0x14   : > { %v1235_v5 = vrot.slane (!%p218_p10), %v4662_v2, %v355_v3  ;;  %v1239_v6 = vrot.slane (!%p218_p10), %v4662_v2, %v359_v4  ;;  %v356_v12 = vrot.slane (!%p218_p10), %v351_v10, %v355_v3  ;;  %v360_v13 = vrot.slane (!%p218_p10), %v351_v10, %v359_v4  ;;  %s6103_s8 = smov (!%p218_p10), 94  }
  0x15   : > { %vm285_vm15 = vcmask (!%p218_p10), 64512  }
  0x16   : > { %s260_s29 = scalar_select %p259_p11, %s6081_s18, 1  ;;  %v6201_v8 = vcombine.low %v1235_v5, %v1239_v6  ;;  %v6213_v14 = vcombine.low %v356_v12, %v360_v13 }
  0x18   : > { %s5937_s6 = smul.u32 12, %s260_s29  ;;  %1241 = vrot.lane.b32.xlu0 %v6201_v8, %s6092_s13  ;;  %s6098_s29 = smov 32  }
  0x1a   : > { %s6195_s9 = scalar_lea.vmem %s7071_s0, %s5937_s6  ;;  %s6101_s6 = smov 34  }
  0x1b   : > { %v6198_v7 = vld [vmem:[%s6195_s9] sm:$0xff]  ;;  %v791_v9 = vld [vmem:[%s6195_s9 + $0x8] sm:$0xf] }
  0x1c   : > { %796 = vrot.lane.b32.xlu1 %v6198_v7, %s6091_s10  ;;  %v6210_v11 = vcombine.high %v6198_v7, %v6198_v7  ;;  %v1228_v17 = vld [vmem:[%s6195_s9 + $0x8] sm:$0xf] }
  0x1d   : > { %v1686_v27 = vld [vmem:[%s6195_s9 + $0x8] sm:$0xf] }
  0x1e   : > { %v2569_v43 = vld [vmem:[%s6195_s9 + $0x8] sm:$0xf] }
  0x1f   : > { %v2132_v54 = vld [vmem:[%s6195_s9 + $0x8] sm:$0xf] }
  0x20   : > { %800 = vrot.lane.b32.xlu1 %v791_v9, %s6091_s10  ;;  %v3015_v57 = vld [vmem:[%s6195_s9 + $0x8] sm:$0xf] }
  0x21   : > { %v3461_v59 = vld [vmem:[%s6195_s9 + $0x8] sm:$0xf] }
  0x24   : > { %798 = vrot.lane.b32.xlu1 %v6210_v11, %s6091_s10 }
  0x28   : > { %1687 = vrot.lane.b32.xlu1 %v6213_v14, %s6093_s14  ;;  %s256_s14 = sand.u32 1, %s6073_s16  }
  0x8a   : > { %v1242_v16 = vpop.permute.xlu0 %1241 }
  0x8b   : > { %v1243_v18 = vrot.slane %v1242_v16, 4 }
  0x8d   : > { %v1245_v20 = vsel %vm1244_vm0, %v1243_v18, %v1242_v16  ;;  %v1249_v21 = vmul.f32 %v1243_v18, %v1228_v17  ;;  %v363_v18 = vmul.f32 %v6198_v7, %v6213_v14 }
  0x8e   : > { %v797_v15 = vpop.permute.xlu1 %796  ;;  %v1248_v22 = vmul.f32 %v1245_v20, %v6198_v7 }
  0x8f   : > { %1258 = vrot.lane.b32.xlu0 %v1249_v21, %s6094_s21  ;;  %v366_v20 = vcombine.high %v363_v18, %v363_v18 }
  0x90   : > { %v1253_v24 = vcombine.high %v1248_v22, %v1248_v22 }
  0x92   : > { %v801_v19 = vpop.permute.xlu1 %800 }
  0x93   : > { %1256 = vrot.lane.b32.xlu0 %v1253_v24, %s6094_s21 }
  0x96   : > { %v799_v23 = vpop.permute.xlu1 %798 }
  0x97   : > { %v6218_v25 = vsel %vm802_vm1, %v797_v15, %v799_v23  ;;  %v6220_v26 = vsel %vm802_vm1, %v799_v23, %v801_v19  ;;  %2137 = vrot.lane.b32.xlu0 %v6198_v7, %s6095_s22  ;;  %v364_v19 = vld [vmem:[%s7072_s1] sm:$0xf] }
  0x98   : > { %5197 = vmatprep.subr.msk.mxu1 %vm529_vm11, %v364_v19 }
  0x99   : > { %5198 = vmatpush3.msk.msra.mxu1 %vm529_vm11, %v364_v19 }
  0x9a   : > { %v1688_v28 = vpop.permute.xlu1 %1687 }
  0x9b   : > { %v1689_v29 = vrot.slane %v1688_v28, 4 }
  0x9d   : > { %v1695_v30 = vmul.f32 %v1689_v29, %v1686_v27  ;;  %v1691_v31 = vsel %vm1690_vm2, %v1689_v29, %v1688_v28 }
  0x9e   : > { %v1694_v32 = vmul.f32 %v1691_v31, %v6198_v7 }
  0x9f   : > { %1704 = vrot.lane.b32.xlu1 %v1695_v30, %s6096_s24 }
  0xa0   : > { %v1699_v33 = vcombine.high %v1694_v32, %v1694_v32 }
  0xa3   : > { %1254 = vrot.lane.b32.xlu1 %v1248_v22, %s6094_s21  ;;  %v792_v22 = vld [vmem:[%s7072_s1 + $0x4] sm:$0xf]  ;;  %s4594_s21 = sshll.u32 %s256_s14, 4 }
  0xa4   : > { %5247 = vmatprep.subr.msk.mxu1 %vm529_vm11, %v792_v22 }
  0xa7   : > { %1700 = vrot.lane.b32.xlu1 %v1694_v32, %s6096_s24 }
  0xab   : > { %1702 = vrot.lane.b32.xlu1 %v1699_v33, %s6096_s24  ;;  %s4899_s24 = sshll.u32 %s6081_s18, 8  ;;  %s6106_s18 = smov [#allocation3]  }
  0xac   : > { %s6015_s10 = sshll.u32 %s6106_s18, 4  ;;  %s6016_s10 = int_to_ptr.vmem [resolvable:$false] %s6015_s10 }
  0xad   : > { %s6017_s11 = scalar_lea.vmem %s6016_s10, 512 }
  0xaf   : > { %2570 = vrot.lane.b32.xlu1 %v6201_v8, %s6097_s26 }
  0xb3   : > { %2139 = vrot.lane.b32.xlu1 %v6210_v11, %s6095_s22 }
  0xb7   : > { %3016 = vrot.lane.b32.xlu1 %v6213_v14, %s6098_s29 }
 0x101   : > { %v1259_v34 = vpop.permute.xlu0 %1258 }
 0x105   : > { %v6230_v35 = vpop.permute.xlu0 %1256 }
 0x106   : > { %v6234_v36 = vsel %vm1260_vm3, %v6230_v35, %v1259_v34 }
 0x109   : > { %v6254_v60 = vpop.permute.xlu0 %2137 }
 0x111   : > { %v1705_v37 = vpop.permute.xlu1 %1704 }
 0x115   : > { %v6236_v38 = vpop.permute.xlu1 %1254 }
 0x119   : > { %v1701_v39 = vpop.permute.xlu1 %1700 }
 0x11d   : > { %v1703_v40 = vpop.permute.xlu1 %1702 }
 0x11e   : > { %v6238_v41 = vsel %vm1706_vm4, %v1701_v39, %v1703_v40  ;;  %v6240_v42 = vsel %vm1706_vm4, %v1703_v40, %v1705_v37 }
 0x121   : > { %v2571_v44 = vpop.permute.xlu1 %2570 }
 0x122   : > { %v2572_v45 = vrot.slane %v2571_v44, 4 }
 0x124   : > { %v2574_v46 = vsel %vm2573_vm5, %v2572_v45, %v2571_v44  ;;  %v2578_v47 = vmul.f32 %v2572_v45, %v2569_v43 }
 0x125   : > { %v2577_v48 = vmul.f32 %v2574_v46, %v6198_v7  ;;  %v6244_v49 = vpop.permute.xlu1 %2139 }
 0x126   : > { %2587 = vrot.lane.b32.xlu0 %v2578_v47, %s6099_s30 }
 0x127   : > { %2583 = vrot.lane.b32.xlu1 %v2577_v48, %s6099_s30  ;;  %v2582_v51 = vcombine.high %v2577_v48, %v2577_v48 }
 0x129   : > { %v3017_v50 = vpop.permute.xlu1 %3016 }
 0x12a   : > { %v3018_v52 = vrot.slane %v3017_v50, 4 }
 0x12b   : > { %2585 = vrot.lane.b32.xlu1 %v2582_v51, %s6099_s30 }
 0x12c   : > { %v3020_v53 = vsel %vm3019_vm6, %v3018_v52, %v3017_v50  ;;  %v3024_v58 = vmul.f32 %v3018_v52, %v3015_v57  ;;  %v1250_v57 = vld [vmem:[%s7072_s1 + $0x8] sm:$0xf] }
 0x12d   : > { %v3023_v55 = vmul.f32 %v3020_v53, %v6198_v7 }
 0x12f   : > { %2141 = vrot.lane.b32.xlu1 %v2132_v54, %s6095_s22  ;;  %v3028_v56 = vcombine.high %v3023_v55, %v3023_v55  ;;  %s6982_s22 = scalar_lea.vmem [#allocation3], %s4594_s21 }
 0x130   : > { %s4472_s26 = sshll.u32 %s6982_s22, 4  ;;  %s7023_s26 = int_to_ptr.vmem [resolvable:$true] %s4472_s26 }
 0x131   : > { %3031 = vrot.lane.b32.xlu0 %v3028_v56, %s6100_s5  ;;  %p6018_p1 = scmp.lt.s32.totalorder %s7023_s26, %s6016_s10 }
 0x133   : > { %3029 = vrot.lane.b32.xlu1 %v3023_v55, %s6100_s5 }
 0x135   : > { %3033 = vrot.lane.b32.xlu0 %v3024_v58, %s6100_s5  ;;  %s7021_s5 = scalar_lea.hbm %s7075_s4, %s4899_s24 }
 0x137   : > { %3899 = vrot.lane.b32.xlu1 %v6201_v8, %s6101_s6  ;;  %s4456_s6 = scalar_lea.sflag [#allocation4], %s256_s14 }
 0x139   : > { %3466 = vrot.lane.b32.xlu0 %v6198_v7, %s6102_s7 }
 0x13d   : > { %3468 = vrot.lane.b32.xlu0 %v6210_v11, %s6102_s7 }
 0x141   : > { %3470 = vrot.lane.b32.xlu0 %v3461_v59, %s6102_s7  ;;  %s6011_s7 = scalar_lea.vmem %s7023_s26, 256 }
 0x142   : > { %p6012_p12 = scmp.ne.s32.totalorder %s7023_s26, %s6011_s7  ;;  %p6019_p2 = scmp.lt.s32.totalorder %s6017_s11, %s6011_s7 }
 0x144   : > { %p6013_p13 = pnand %p6012_p12, %p6172_p4  ;;  %p6020_p3 = por %p6019_p2, %p6018_p1 }
 0x146   : > { %p6014_p0 = pneg %p6013_p13 }
 0x148   : > { %p6021_p5 = pnand %p6020_p3, %p6014_p0 }
 0x198   : > { %v2588_v62 = vpop.permute.xlu0 %2587 }
 0x199   : > { %v2584_v61 = vpop.permute.xlu1 %2583 }
 0x19d   : > { %v2586_v63 = vpop.permute.xlu1 %2585 }
 0x19e   : > { %v6256_v0 = vsel %vm2589_vm7, %v2584_v61, %v2586_v63  ;;  %v6258_v1 = vsel %vm2589_vm7, %v2586_v63, %v2588_v62 }
 0x1a1   : > { %v6260_v2 = vpop.permute.xlu1 %2141 }
 0x1a3   : > { %v3032_v3 = vpop.permute.xlu0 %3031 }
 0x1a5   : > { %v3030_v4 = vpop.permute.xlu1 %3029 }
 0x1a6   : > { %v6262_v5 = vsel %vm3035_vm8, %v3030_v4, %v3032_v3 }
 0x1a7   : > { %v3034_v6 = vpop.permute.xlu0 %3033 }
 0x1a8   : > { %v6264_v8 = vsel %vm3035_vm8, %v3032_v3, %v3034_v6 }
 0x1a9   : > { %v6266_v9 = vpop.permute.xlu1 %3899 }
 0x1aa   : > { %v3901_v10 = vrot.slane %v6266_v9, 4 }
 0x1ab   : > { %v3467_v11 = vpop.permute.xlu0 %3466 }
 0x1ac   : > { %v3903_v12 = vsel %vm3902_vm9, %v3901_v10, %v6266_v9 }
 0x1ad   : > { %v3906_v13 = vmul.f32 %v3903_v12, %v6198_v7  ;;  %v1261_v7 = vsel %vm1260_vm3, %v6236_v38, %v6230_v35 }
 0x1af   : > { %3912 = vrot.lane.b32.xlu1 %v3906_v13, %s6103_s8  ;;  %v3911_v15 = vcombine.high %v3906_v13, %v3906_v13  ;;  %v6274_v16 = vpop.permute.xlu0 %3468 }
 0x1b0   : > { %v6278_v17 = vsel %vm3472_vm10, %v3467_v11, %v6274_v16 }
 0x1b1   : > { %3914 = vrot.lane.b32.xlu0 %v3911_v15, %s6103_s8 }
 0x1b3   : > { %v6290_v21 = vpop.permute.xlu0 %3470 }
 0x1cf   : > { %368 = vxpose.xlu0.b32.start.end [1/1] (short) %v363_v18, 128 }
 0x1d8   : > { %807 = vxpose.xlu1.b32.start.end [1/1] (short) %v6218_v25, 128 }
 0x20c   : > { %400 = vxpose.xlu0.b32.start.end [1/1] (short) %v366_v20, 128 }
 0x215   : > { %839 = vxpose.xlu1.b32.start.end [1/1] (short) %v6220_v26, 128 }
 0x221   : > { %v6303_v25 = vpop.permute.xlu1 %3912 }
 0x223   : > { %v6295_v14 = vpop.permute.xlu0 %3914 }
 0x249   : > { %1265 = vxpose.xlu0.b32.start.end [1/1] (short) %v1261_v7, 128 }
 0x24f   : > { %v384_v23 = vpop.trf.xlu0 }
 0x250   : > { %5199 = vmatprep.mubr.msk.f32.mxu1 %vm432_vm12, %v384_v23 }
 0x252   : > { %1711 = vxpose.xlu1.b32.start.end [1/1] (short) %v6238_v41, 128 }
 0x253   : > { %v385_v24 = vpop.trf.xlu0 }
 0x254   : > { %5200 = vmatmul.mubr.msk.f32.vlgmr.msra.gmra.mrb[0].mxu1 %vm432_vm12, %v385_v24 }
 0x255   : > { %5248 = vmatpush3.msk.msra.mxu1 %vm529_vm11, %v792_v22 }
 0x256   : > { %5297 = vmatprep.subr.msk.mxu1 %vm529_vm11, %v1250_v57 }
 0x257   : > { %v386_v26 = vpop.trf.xlu0 }
 0x258   : > { %v6307_v27 = vpop.trf.xlu1  ;;  %5202 = vmatprep.mubr.msk.f32.mxu1 %vm432_vm12, %v386_v26 }
 0x25b   : > { %v387_v28 = vpop.trf.xlu0 }
 0x25c   : > { %v6310_v29 = vpop.trf.xlu1  ;;  %5203 = vmatmul.mubr.msk.f32.gmra.mrb[2].mxu1 %vm432_vm12, %v387_v28 }
 0x25f   : > { %v388_v30 = vpop.trf.xlu0 }
 0x260   : > { %v6313_v31 = vpop.trf.xlu1  ;;  %5205 = vmatprep.mubr.msk.f32.mxu1 %vm432_vm12, %v388_v30 }
 0x263   : > { %v389_v32 = vpop.trf.xlu0 }
 0x264   : > { %v6316_v33 = vpop.trf.xlu1  ;;  %5206 = vmatmul.mubr.msk.f32.gmra.mrb[4].mxu1 %vm432_vm12, %v389_v32 }
 0x267   : > { %v390_v34 = vpop.trf.xlu0 }
 0x268   : > { %v6319_v35 = vpop.trf.xlu1  ;;  %5208 = vmatprep.mubr.msk.f32.mxu1 %vm432_vm12, %v390_v34 }
 0x26b   : > { %v391_v37 = vpop.trf.xlu0 }
 0x26c   : > { %v6322_v38 = vpop.trf.xlu1  ;;  %5209 = vmatmul.mubr.msk.f32.gmra.mrb[6].mxu1 %vm432_vm12, %v391_v37 }
 0x26f   : > { %v392_v39 = vpop.trf.xlu0 }
 0x270   : > { %v6325_v40 = vpop.trf.xlu1  ;;  %5211 = vmatprep.mubr.msk.f32.mxu1 %vm432_vm12, %v392_v39 }
 0x273   : > { %v393_v41 = vpop.trf.xlu0 }
 0x274   : > { %v6328_v43 = vpop.trf.xlu1  ;;  %5212 = vmatmul.mubr.msk.f32.gmra.mrb[8].mxu1 %vm432_vm12, %v393_v41 }
 0x277   : > { %v394_v44 = vpop.trf.xlu0 }
 0x278   : > { %v6331_v45 = vpop.trf.xlu1  ;;  %5214 = vmatprep.mubr.msk.f32.mxu1 %vm432_vm12, %v394_v44 }
 0x27b   : > { %v395_v46 = vpop.trf.xlu0 }
 0x27c   : > { %v6334_v47 = vpop.trf.xlu1  ;;  %5215 = vmatmul.mubr.msk.f32.gmra.mrb[10].mxu1 %vm432_vm12, %v395_v46 }
 0x27f   : > { %v396_v48 = vpop.trf.xlu0 }
 0x280   : > { %v6337_v50 = vpop.trf.xlu1  ;;  %5217 = vmatprep.mubr.msk.f32.mxu1 %vm432_vm12, %v396_v48 }
 0x283   : > { %v397_v51 = vpop.trf.xlu0 }
 0x284   : > { %v6340_v52 = vpop.trf.xlu1  ;;  %5218 = vmatmul.mubr.msk.f32.gmra.mrb[12].mxu1 %vm432_vm12, %v397_v51 }
 0x287   : > { %v398_v53 = vpop.trf.xlu0  ;;  %1297 = vxpose.xlu0.b32.start.end [1/1] (short) %v6234_v36, 128  ;;  %v2144_v36 = vsel %vm2143_vm13, %v6254_v60, %v6244_v49 }
 0x288   : > { %v6344_v54 = vpop.trf.xlu1  ;;  %5220 = vmatprep.mubr.msk.f32.mxu1 %vm432_vm12, %v398_v53 }
 0x28b   : > { %v399_v55 = vpop.trf.xlu0 }
 0x28c   : > { %v6347_v56 = vpop.trf.xlu1  ;;  %5221 = vmatmul.mubr.msk.f32.gmra.mrb[14].mxu1 %vm432_vm12, %v399_v55  ;;  %v6413_v55 = vld [vmem:[%s7072_s1 + $0xc] sm:$0xf] }
 0x28f   : > { %v416_v58 = vpop.trf.xlu0 }
 0x290   : > { %v6357_v59 = vpop.trf.xlu1  ;;  %2148 = vxpose.xlu1.b32.start.end [1/1] (short) %v2144_v36, 128  ;;  %5223 = vmatprep.mubr.msk.f32.mxu1 %vm432_vm12, %v416_v58 }
 0x293   : > { %v417_v61 = vpop.trf.xlu0 }
 0x294   : > { %v6360_v62 = vpop.trf.xlu1  ;;  %5224 = vmatmul.mubr.msk.f32.gmra.mrb[16].mxu1 %vm432_vm12, %v417_v61 }
 0x297   : > { %v418_v63 = vpop.trf.xlu0 }
 0x298   : > { %v6363_v3 = vpop.trf.xlu1  ;;  %5226 = vmatprep.mubr.msk.f32.mxu1 %vm432_vm12, %v418_v63 }
 0x29b   : > { %v419_v4 = vpop.trf.xlu0 }
 0x29c   : > { %v6366_v6 = vpop.trf.xlu1  ;;  %5227 = vmatmul.mubr.msk.f32.gmra.mrb[18].mxu1 %vm432_vm12, %v419_v4 }
 0x29f   : > { %v420_v60 = vpop.trf.xlu0 }
 0x2a0   : > { %v6369_v11 = vpop.trf.xlu1  ;;  %5229 = vmatprep.mubr.msk.f32.mxu1 %vm432_vm12, %v420_v60 }
 0x2a3   : > { %v421_v12 = vpop.trf.xlu0 }
 0x2a4   : > { %v6372_v13 = vpop.trf.xlu1  ;;  %5230 = vmatmul.mubr.msk.f32.gmra.mrb[20].mxu1 %vm432_vm12, %v421_v12 }
 0x2a7   : > { %v422_v15 = vpop.trf.xlu0 }
 0x2a8   : > { %v6375_v18 = vpop.trf.xlu1  ;;  %5232 = vmatprep.mubr.msk.f32.mxu1 %vm432_vm12, %v422_v15 }
 0x2ab   : > { %v423_v19 = vpop.trf.xlu0 }
 0x2ac   : > { %v6378_v20 = vpop.trf.xlu1  ;;  %5233 = vmatmul.mubr.msk.f32.gmra.mrb[22].mxu1 %vm432_vm12, %v423_v19 }
 0x2af   : > { %v424_v7 = vpop.trf.xlu0 }
 0x2b0   : > { %v6381_v22 = vpop.trf.xlu1  ;;  %5235 = vmatprep.mubr.msk.f32.mxu1 %vm432_vm12, %v424_v7 }
 0x2b3   : > { %v425_v23 = vpop.trf.xlu0 }
 0x2b4   : > { %v6384_v24 = vpop.trf.xlu1  ;;  %5236 = vmatmul.mubr.msk.f32.gmra.mrb[24].mxu1 %vm432_vm12, %v425_v23 }
 0x2b7   : > { %v426_v26 = vpop.trf.xlu0 }
 0x2b8   : > { %v6387_v28 = vpop.trf.xlu1  ;;  %5238 = vmatprep.mubr.msk.f32.mxu1 %vm432_vm12, %v426_v26 }
 0x2bb   : > { %v427_v30 = vpop.trf.xlu0 }
 0x2bc   : > { %v6390_v32 = vpop.trf.xlu1  ;;  %5239 = vmatmul.mubr.msk.f32.gmra.mrb[26].mxu1 %vm432_vm12, %v427_v30 }
 0x2bf   : > { %v428_v34 = vpop.trf.xlu0 }
 0x2c0   : > { %v6393_v37 = vpop.trf.xlu1  ;;  %5241 = vmatprep.mubr.msk.f32.mxu1 %vm432_vm12, %v428_v34 }
 0x2c3   : > { %v429_v39 = vpop.trf.xlu0 }
 0x2c4   : > { %v6396_v41 = vpop.trf.xlu1  ;;  %5242 = vmatmul.mubr.msk.f32.gmra.mrb[28].mxu1 %vm432_vm12, %v429_v39 }
 0x2c7   : > { %v430_v44 = vpop.trf.xlu0  ;;  %1743 = vxpose.xlu0.b32.start.end [1/1] (short) %v6240_v42, 128 }
 0x2c8   : > { %v6400_v46 = vpop.trf.xlu1  ;;  %5244 = vmatprep.mubr.msk.f32.mxu1 %vm432_vm12, %v430_v44 }
 0x2cb   : > { %v431_v48 = vpop.trf.xlu0 }
 0x2cc   : > { %v6403_v51 = vpop.trf.xlu1  ;;  %5245 = vmatmul.mubr.msk.f32.gmra.mrb[30].mxu1 %vm432_vm12, %v431_v48 }
 0x2cd   : > { %5249 = vmatprep.mubr.msk.f32.mxu1 %vm432_vm12, %v6307_v27 }
 0x2cf   : > { %v6408_v53 = vpop.trf.xlu0 }
 0x2d0   : > { %v6415_v42 = vpop.trf.xlu1  ;;  %2594 = vxpose.xlu1.b32.start.end [1/1] (short) %v6256_v0, 128  ;;  %5250 = vmatmul.mubr.msk.f32.vlgmr.msra.gmra.mrb[0].mxu1 %vm432_vm12, %v6310_v29 }
 0x2d1   : > { %5252 = vmatprep.mubr.msk.f32.mxu1 %vm432_vm12, %v6313_v31  ;;  %5298 = vmatpush3.msk.msra.mxu1 %vm529_vm11, %v1250_v57 }
 0x2d2   : > { %5347 = vmatprep.subr.msk.mxu1 %vm529_vm11, %v6413_v55 }
 0x2d3   : > { %v6425_v27 = vpop.trf.xlu0 }
 0x2d4   : > { %v6427_v58 = vpop.trf.xlu1  ;;  %5253 = vmatmul.mubr.msk.f32.gmra.mrb[2].mxu1 %vm432_vm12, %v6316_v33 }
 0x2d5   : > { %5255 = vmatprep.mubr.msk.f32.mxu1 %vm432_vm12, %v6319_v35  ;;  %v6454_v35 = vld [vmem:[%s7072_s1 + $0x10] sm:$0xf] }
 0x2d6   : > { %5397 = vmatprep.subr.msk.mxu0 %vm529_vm11, %v6454_v35 }
 0x2d7   : > { %v6433_v0 = vpop.trf.xlu0  ;;  %5398 = vmatpush3.msk.msra.mxu0 %vm529_vm11, %v6454_v35 }
 0x2d8   : > { %v6435_v29 = vpop.trf.xlu1  ;;  %5256 = vmatmul.mubr.msk.f32.gmra.mrb[4].mxu1 %vm432_vm12, %v6322_v38 }
 0x2d9   : > { %5258 = vmatprep.mubr.msk.f32.mxu1 %vm432_vm12, %v6325_v40 }
 0x2db   : > { %v6441_v31 = vpop.trf.xlu0 }
 0x2dc   : > { %v6443_v57 = vpop.trf.xlu1  ;;  %5259 = vmatmul.mubr.msk.f32.gmra.mrb[6].mxu1 %vm432_vm12, %v6328_v43 }
 0x2dd   : > { %5261 = vmatprep.mubr.msk.f32.mxu1 %vm432_vm12, %v6331_v45 }
 0x2df   : > { %v6449_v33 = vpop.trf.xlu0 }
 0x2e0   : > { %v6456_v38 = vpop.trf.xlu1  ;;  %5262 = vmatmul.mubr.msk.f32.gmra.mrb[8].mxu1 %vm432_vm12, %v6334_v47 }
 0x2e1   : > { %5264 = vmatprep.mubr.msk.f32.mxu1 %vm432_vm12, %v6337_v50 }
 0x2e3   : > { %v1286_v40 = vpop.trf.xlu0 }
 0x2e4   : > { %v6466_v43 = vpop.trf.xlu1  ;;  %5265 = vmatmul.mubr.msk.f32.gmra.mrb[10].mxu1 %vm432_vm12, %v6340_v52 }
 0x2e5   : > { %5267 = vmatprep.mubr.msk.f32.mxu1 %vm432_vm12, %v6344_v54 }
 0x2e7   : > { %v1287_v45 = vpop.trf.xlu0 }
 0x2e8   : > { %v6472_v47 = vpop.trf.xlu1  ;;  %5268 = vmatmul.mubr.msk.f32.gmra.mrb[12].mxu1 %vm432_vm12, %v6347_v56 }
 0x2e9   : > { %5270 = vmatprep.mubr.msk.f32.mxu1 %vm432_vm12, %v6357_v59 }
 0x2eb   : > { %v1288_v50 = vpop.trf.xlu0 }
 0x2ec   : > { %v6478_v36 = vpop.trf.xlu1  ;;  %5271 = vmatmul.mubr.msk.f32.gmra.mrb[14].mxu1 %vm432_vm12, %v6360_v62 }
 0x2ed   : > { %5273 = vmatprep.mubr.msk.f32.mxu1 %vm432_vm12, %v6363_v3 }
 0x2ef   : > { %v1289_v52 = vpop.trf.xlu0 }
 0x2f0   : > { %v6484_v54 = vpop.trf.xlu1  ;;  %5274 = vmatmul.mubr.msk.f32.gmra.mrb[16].mxu1 %vm432_vm12, %v6366_v6  ;;  %v2579_v6 = vld [vmem:[%s7072_s1 + $0x14] sm:$0xf] }
 0x2f1   : > { %5276 = vmatprep.mubr.msk.f32.mxu1 %vm432_vm12, %v6369_v11  ;;  %5447 = vmatprep.subr.msk.mxu0 %vm529_vm11, %v2579_v6 }
 0x2f3   : > { %v1290_v56 = vpop.trf.xlu0 }
 0x2f4   : > { %v6490_v59 = vpop.trf.xlu1  ;;  %5277 = vmatmul.mubr.msk.f32.gmra.mrb[18].mxu1 %vm432_vm12, %v6372_v13 }
 0x2f5   : > { %5279 = vmatprep.mubr.msk.f32.mxu1 %vm432_vm12, %v6375_v18 }
 0x2f7   : > { %v1291_v61 = vpop.trf.xlu0 }
 0x2f8   : > { %v6496_v62 = vpop.trf.xlu1  ;;  %5280 = vmatmul.mubr.msk.f32.gmra.mrb[20].mxu1 %vm432_vm12, %v6378_v20 }
 0x2f9   : > { %5282 = vmatprep.mubr.msk.f32.mxu1 %vm432_vm12, %v6381_v22 }
 0x2fb   : > { %v1292_v63 = vpop.trf.xlu0 }
 0x2fc   : > { %v6502_v3 = vpop.trf.xlu1  ;;  %5283 = vmatmul.mubr.msk.f32.gmra.mrb[22].mxu1 %vm432_vm12, %v6384_v24 }
 0x2fd   : > { %5285 = vmatprep.mubr.msk.f32.mxu1 %vm432_vm12, %v6387_v28 }
 0x2ff   : > { %v1293_v4 = vpop.trf.xlu0 }
 0x300   : > { %v6511_v60 = vpop.trf.xlu1  ;;  %5286 = vmatmul.mubr.msk.f32.gmra.mrb[24].mxu1 %vm432_vm12, %v6390_v32 }
 0x301   : > { %5288 = vmatprep.mubr.msk.f32.mxu1 %vm432_vm12, %v6393_v37 }
 0x303   : > { %v1294_v11 = vpop.trf.xlu0 }
 0x304   : > { %v6518_v12 = vpop.trf.xlu1  ;;  %5289 = vmatmul.mubr.msk.f32.gmra.mrb[26].mxu1 %vm432_vm12, %v6396_v41 }
 0x305   : > { %5291 = vmatprep.mubr.msk.f32.mxu1 %vm432_vm12, %v6400_v46 }
 0x307   : > { %v1295_v13 = vpop.trf.xlu0  ;;  %2626 = vxpose.xlu0.b32.start.end [1/1] (short) %v6258_v1, 128 }
 0x308   : > { %v6525_v15 = vpop.trf.xlu1  ;;  %5292 = vmatmul.mubr.msk.f32.gmra.mrb[28].mxu1 %vm432_vm12, %v6403_v51 }
 0x309   : > { %5294 = vmatprep.mubr.msk.f32.mxu1 %vm432_vm12, %v6415_v42 }
 0x30b   : > { %v1296_v18 = vpop.trf.xlu0 }
 0x30c   : > { %v6531_v19 = vpop.trf.xlu1  ;;  %5295 = vmatmul.mubr.msk.f32.gmra.mrb[30].mxu1 %vm432_vm12, %v6427_v58 }
 0x30d   : > { %5299 = vmatprep.mubr.msk.f32.mxu1 %vm432_vm12, %v6408_v53 }
 0x30f   : > { %v1313_v20 = vpop.trf.xlu0 }
 0x310   : > { %v6537_v7 = vpop.trf.xlu1  ;;  %3040 = vxpose.xlu1.b32.start.end [1/1] (short) %v6262_v5, 128  ;;  %5300 = vmatmul.mubr.msk.f32.vlgmr.msra.gmra.mrb[0].mxu1 %vm432_vm12, %v6425_v27 }
 0x311   : > { %5302 = vmatprep.mubr.msk.f32.mxu1 %vm432_vm12, %v6433_v0  ;;  %5348 = vmatpush3.msk.msra.mxu1 %vm529_vm11, %v6413_v55 }
 0x312   : > { %5647 = vmatprep.subr.msk.mxu1 %vm529_vm11, %v6454_v35 }
 0x313   : > { %v1314_v1 = vpop.trf.xlu0 }
 0x314   : > { %v6548_v22 = vpop.trf.xlu1  ;;  %5303 = vmatmul.mubr.msk.f32.gmra.mrb[2].mxu1 %vm432_vm12, %v6441_v31 }
 0x315   : > { %5305 = vmatprep.mubr.msk.f32.mxu1 %vm432_vm12, %v6449_v33 }
 0x317   : > { %v1315_v5 = vpop.trf.xlu0 }
 0x318   : > { %v2164_v23 = vpop.trf.xlu1  ;;  %5306 = vmatmul.mubr.msk.f32.gmra.mrb[4].mxu1 %vm432_vm12, %v1286_v40 }
 0x319   : > { %5308 = vmatprep.mubr.msk.f32.mxu1 %vm432_vm12, %v1287_v45  ;;  %5399 = vmatprep.mubr.msk.f32.mxu0 %vm432_vm12, %v2164_v23  ;;  %v3474_v23 = vsel %vm3472_vm10, %v6274_v16, %v6290_v21  ;;  %v3919_v21 = vsel %vm3918_vm14, %v6303_v25, %v6295_v14 }
 0x31b   : > { %v1316_v24 = vpop.trf.xlu0 }
 0x31c   : > { %v2165_v26 = vpop.trf.xlu1  ;;  %5309 = vmatmul.mubr.msk.f32.gmra.mrb[6].mxu1 %vm432_vm12, %v1288_v50 }
 0x31d   : > { %5311 = vmatprep.mubr.msk.f32.mxu1 %vm432_vm12, %v1289_v52  ;;  %5400 = vmatmul.mubr.msk.f32.vlgmr.msra.gmra.mrb[0].mxu0 %vm432_vm12, %v2165_v26 }
 0x31e   : > { %5448 = vmatpush3.msk.msra.mxu0 %vm529_vm11, %v2579_v6 }
 0x31f   : > { %v1317_v28 = vpop.trf.xlu0 }
 0x320   : > { %v2166_v30 = vpop.trf.xlu1  ;;  %5312 = vmatmul.mubr.msk.f32.gmra.mrb[8].mxu1 %vm432_vm12, %v1290_v56 }
 0x321   : > { %5314 = vmatprep.mubr.msk.f32.mxu1 %vm432_vm12, %v1291_v61  ;;  %5402 = vmatprep.mubr.msk.f32.mxu0 %vm432_vm12, %v2166_v30  ;;  %v3025_v61 = vld [vmem:[%s7072_s1 + $0x18] sm:$0xf] }
 0x322   : > { %5497 = vmatprep.subr.msk.mxu0 %vm529_vm11, %v3025_v61 }
 0x323   : > { %v1318_v32 = vpop.trf.xlu0 }
 0x324   : > { %v2167_v34 = vpop.trf.xlu1  ;;  %5315 = vmatmul.mubr.msk.f32.gmra.mrb[10].mxu1 %vm432_vm12, %v1292_v63 }
 0x325   : > { %5317 = vmatprep.mubr.msk.f32.mxu1 %vm432_vm12, %v1293_v4  ;;  %5403 = vmatmul.mubr.msk.f32.gmra.mrb[2].mxu0 %vm432_vm12, %v2167_v34 }
 0x327   : > { %v1319_v37 = vpop.trf.xlu0 }
 0x328   : > { %v2168_v39 = vpop.trf.xlu1  ;;  %5318 = vmatmul.mubr.msk.f32.gmra.mrb[12].mxu1 %vm432_vm12, %v1294_v11 }
 0x329   : > { %5320 = vmatprep.mubr.msk.f32.mxu1 %vm432_vm12, %v1295_v13  ;;  %5405 = vmatprep.mubr.msk.f32.mxu0 %vm432_vm12, %v2168_v39 }
 0x32b   : > { %v1320_v41 = vpop.trf.xlu0 }
 0x32c   : > { %v2169_v44 = vpop.trf.xlu1  ;;  %5321 = vmatmul.mubr.msk.f32.gmra.mrb[14].mxu1 %vm432_vm12, %v1296_v18 }
 0x32d   : > { %5323 = vmatprep.mubr.msk.f32.mxu1 %vm432_vm12, %v1313_v20  ;;  %5406 = vmatmul.mubr.msk.f32.gmra.mrb[4].mxu0 %vm432_vm12, %v2169_v44 }
 0x32f   : > { %v1321_v46 = vpop.trf.xlu0 }
 0x330   : > { %v2170_v48 = vpop.trf.xlu1  ;;  %5324 = vmatmul.mubr.msk.f32.gmra.mrb[16].mxu1 %vm432_vm12, %v1314_v1 }
 0x331   : > { %5326 = vmatprep.mubr.msk.f32.mxu1 %vm432_vm12, %v1315_v5  ;;  %5408 = vmatprep.mubr.msk.f32.mxu0 %vm432_vm12, %v2170_v48  ;;  %v6104_v48 = vmov 0.0  }
 0x332   : > { %287 = vst.msk [vmem:[#allocation2 + $0x8] sm:$0xff] %vm285_vm15, %v6104_v48  ;;  %286 = vst.msk [vmem:[#allocation2] sm:$0xff] %vm285_vm15, %v6104_v48 }
 0x333   : > { %v1322_v51 = vpop.trf.xlu0  ;;  %288 = vst.msk [vmem:[#allocation2 + $0x10] sm:$0xff] %vm285_vm15, %v6104_v48  ;;  %289 = vst.msk [vmem:[#allocation2 + $0x18] sm:$0xff] %vm285_vm15, %v6104_v48 }
 0x334   : > { %v2171_v53 = vpop.trf.xlu1  ;;  %5327 = vmatmul.mubr.msk.f32.gmra.mrb[18].mxu1 %vm432_vm12, %v1316_v24  ;;  %290 = vst.msk [vmem:[#allocation2 + $0x20] sm:$0xff] %vm285_vm15, %v6104_v48  ;;  %291 = vst.msk [vmem:[#allocation2 + $0x28] sm:$0xff] %vm285_vm15, %v6104_v48 }
 0x335   : > { %5329 = vmatprep.mubr.msk.f32.mxu1 %vm432_vm12, %v1317_v28  ;;  %5409 = vmatmul.mubr.msk.f32.gmra.mrb[6].mxu0 %vm432_vm12, %v2171_v53  ;;  %292 = vst.msk [vmem:[#allocation2 + $0x30] sm:$0xff] %vm285_vm15, %v6104_v48  ;;  %293 = vst.msk [vmem:[#allocation2 + $0x38] sm:$0xff] %vm285_vm15, %v6104_v48 }
 0x336   : > { %294 = vst.msk [vmem:[#allocation2 + $0x40] sm:$0xff] %vm285_vm15, %v6104_v48  ;;  %295 = vst.msk [vmem:[#allocation2 + $0x48] sm:$0xff] %vm285_vm15, %v6104_v48 }
 0x337   : > { %v1323_v55 = vpop.trf.xlu0  ;;  %296 = vst.msk [vmem:[#allocation2 + $0x50] sm:$0xff] %vm285_vm15, %v6104_v48  ;;  %297 = vst.msk [vmem:[#allocation2 + $0x58] sm:$0xff] %vm285_vm15, %v6104_v48 }
 0x338   : > { %v2172_v42 = vpop.trf.xlu1  ;;  %5330 = vmatmul.mubr.msk.f32.gmra.mrb[20].mxu1 %vm432_vm12, %v1318_v32  ;;  %v6674_v32 = vld [vmem:[%s7072_s1 + $0x1c] sm:$0xf]  ;;  %298 = vst.msk [vmem:[#allocation2 + $0x60] sm:$0xff] %vm285_vm15, %v6104_v48  ;;  %299 = vst.msk [vmem:[#allocation2 + $0x68] sm:$0xff] %vm285_vm15, %v6104_v48 }
 0x339   : > { %5332 = vmatprep.mubr.msk.f32.mxu1 %vm432_vm12, %v1319_v37  ;;  %5411 = vmatprep.mubr.msk.f32.mxu0 %vm432_vm12, %v2172_v42  ;;  %300 = vst.msk [vmem:[#allocation2 + $0x70] sm:$0xff] %vm285_vm15, %v6104_v48  ;;  %301 = vst.msk [vmem:[#allocation2 + $0x78] sm:$0xff] %vm285_vm15, %v6104_v48 }
 0x33a   : > { %302 = vst.msk [vmem:[#allocation2 + $0x80] sm:$0xff] %vm285_vm15, %v6104_v48  ;;  %303 = vst.msk [vmem:[#allocation2 + $0x88] sm:$0xff] %vm285_vm15, %v6104_v48 }
 0x33b   : > { %v1324_v27 = vpop.trf.xlu0  ;;  %304 = vst.msk [vmem:[#allocation2 + $0x90] sm:$0xff] %vm285_vm15, %v6104_v48  ;;  %305 = vst.msk [vmem:[#allocation2 + $0x98] sm:$0xff] %vm285_vm15, %v6104_v48 }
 0x33c   : > { %v2173_v58 = vpop.trf.xlu1  ;;  %5333 = vmatmul.mubr.msk.f32.gmra.mrb[22].mxu1 %vm432_vm12, %v1320_v41  ;;  %306 = vst.msk [vmem:[#allocation2 + $0xa0] sm:$0xff] %vm285_vm15, %v6104_v48  ;;  %307 = vst.msk [vmem:[#allocation2 + $0xa8] sm:$0xff] %vm285_vm15, %v6104_v48 }
 0x33d   : > { %5335 = vmatprep.mubr.msk.f32.mxu1 %vm432_vm12, %v1321_v46  ;;  %5412 = vmatmul.mubr.msk.f32.gmra.mrb[8].mxu0 %vm432_vm12, %v2173_v58  ;;  %308 = vst.msk [vmem:[#allocation2 + $0xb0] sm:$0xff] %vm285_vm15, %v6104_v48  ;;  %309 = vst.msk [vmem:[#allocation2 + $0xb8] sm:$0xff] %vm285_vm15, %v6104_v48 }
 0x33e   : > { %310 = vst.msk [vmem:[#allocation2 + $0xc0] sm:$0xff] %vm285_vm15, %v6104_v48  ;;  %311 = vst.msk [vmem:[#allocation2 + $0xc8] sm:$0xff] %vm285_vm15, %v6104_v48 }
 0x33f   : > { %v1325_v0 = vpop.trf.xlu0  ;;  %312 = vst.msk [vmem:[#allocation2 + $0xd0] sm:$0xff] %vm285_vm15, %v6104_v48  ;;  %313 = vst.msk [vmem:[#allocation2 + $0xd8] sm:$0xff] %vm285_vm15, %v6104_v48 }
 0x340   : > { %v2174_v31 = vpop.trf.xlu1  ;;  %5336 = vmatmul.mubr.msk.f32.gmra.mrb[24].mxu1 %vm432_vm12, %v1322_v51  ;;  %314 = vst.msk [vmem:[#allocation2 + $0xe0] sm:$0xff] %vm285_vm15, %v6104_v48  ;;  %315 = vst.msk [vmem:[#allocation2 + $0xe8] sm:$0xff] %vm285_vm15, %v6104_v48 }
 0x341   : > { %5338 = vmatprep.mubr.msk.f32.mxu1 %vm432_vm12, %v1323_v55  ;;  %5414 = vmatprep.mubr.msk.f32.mxu0 %vm432_vm12, %v2174_v31  ;;  %316 = vst.msk [vmem:[#allocation2 + $0xf0] sm:$0xff] %vm285_vm15, %v6104_v48  ;;  %317 = vst.msk [vmem:[#allocation2 + $0xf8] sm:$0xff] %vm285_vm15, %v6104_v48 }
 0x343   : > { %v1326_v33 = vpop.trf.xlu0 }
 0x344   : > { %v2175_v40 = vpop.trf.xlu1  ;;  %5339 = vmatmul.mubr.msk.f32.gmra.mrb[26].mxu1 %vm432_vm12, %v1324_v27 }
 0x345   : > { %5341 = vmatprep.mubr.msk.f32.mxu1 %vm432_vm12, %v1325_v0  ;;  %5415 = vmatmul.mubr.msk.f32.gmra.mrb[10].mxu0 %vm432_vm12, %v2175_v40 }
 0x347   : > { %v1327_v45 = vpop.trf.xlu0  ;;  %3072 = vxpose.xlu0.b32.start.end [1/1] (short) %v6264_v8, 128 }
 0x348   : > { %v2176_v50 = vpop.trf.xlu1  ;;  %5342 = vmatmul.mubr.msk.f32.gmra.mrb[28].mxu1 %vm432_vm12, %v1326_v33 }
 0x349   : > { %5344 = vmatprep.mubr.msk.f32.mxu1 %vm432_vm12, %v1327_v45  ;;  %5417 = vmatprep.mubr.msk.f32.mxu0 %vm432_vm12, %v2176_v50 }
 0x34b   : > { %v1328_v52 = vpop.trf.xlu0 }
 0x34c   : > { %v2177_v56 = vpop.trf.xlu1  ;;  %5345 = vmatmul.mubr.msk.f32.gmra.mrb[30].mxu1 %vm432_vm12, %v1328_v52 }
 0x34d   : > { %5349 = vmatprep.mubr.msk.f32.mxu1 %vm432_vm12, %v6435_v29  ;;  %5418 = vmatmul.mubr.msk.f32.gmra.mrb[12].mxu0 %vm432_vm12, %v2177_v56 }
 0x34f   : > { %v1759_v8 = vpop.trf.xlu0 }
 0x350   : > { %v2178_v63 = vpop.trf.xlu1  ;;  %3477 = vxpose.xlu1.b32.start.end [1/1] (short) %v6278_v17, 128  ;;  %5350 = vmatmul.mubr.msk.f32.vlgmr.msra.gmra.mrb[0].mxu1 %vm432_vm12, %v6443_v57 }
 0x351   : > { %5352 = vmatprep.mubr.msk.f32.mxu1 %vm432_vm12, %v6456_v38  ;;  %5420 = vmatprep.mubr.msk.f32.mxu0 %vm432_vm12, %v2178_v63 }
 0x352   : > { %5648 = vmatpush3.msk.msra.mxu1 %vm529_vm11, %v6454_v35 }
 0x353   : > { %v1760_v29 = vpop.trf.xlu0 }
 0x354   : > { %v2179_v4 = vpop.trf.xlu1  ;;  %5353 = vmatmul.mubr.msk.f32.gmra.mrb[2].mxu1 %vm432_vm12, %v6466_v43 }
 0x355   : > { %5355 = vmatprep.mubr.msk.f32.mxu1 %vm432_vm12, %v6472_v47  ;;  %5421 = vmatmul.mubr.msk.f32.gmra.mrb[14].mxu0 %vm432_vm12, %v2179_v4 }
 0x357   : > { %v1761_v17 = vpop.trf.xlu0 }
 0x358   : > { %v2610_v57 = vpop.trf.xlu1  ;;  %5356 = vmatmul.mubr.msk.f32.gmra.mrb[4].mxu1 %vm432_vm12, %v6478_v36 }
 0x359   : > { %5358 = vmatprep.mubr.msk.f32.mxu1 %vm432_vm12, %v6484_v54  ;;  %5449 = vmatprep.mubr.msk.f32.mxu0 %vm432_vm12, %v2610_v57 }
 0x35b   : > { %v1762_v35 = vpop.trf.xlu0 }
 0x35c   : > { %v2611_v38 = vpop.trf.xlu1  ;;  %5359 = vmatmul.mubr.msk.f32.gmra.mrb[6].mxu1 %vm432_vm12, %v6490_v59 }
 0x35d   : > { %5361 = vmatprep.mubr.msk.f32.mxu1 %vm432_vm12, %v6496_v62  ;;  %5450 = vmatmul.mubr.msk.f32.vlgmr.msra.gmra.mrb[0].mxu0 %vm432_vm12, %v2611_v38 }
 0x35e   : > { %5498 = vmatpush3.msk.msra.mxu0 %vm529_vm11, %v3025_v61 }
 0x35f   : > { %v1763_v43 = vpop.trf.xlu0  ;;  %5547 = vmatprep.subr.msk.mxu0 %vm529_vm11, %v6674_v32 }
 0x360   : > { %v2612_v47 = vpop.trf.xlu1  ;;  %5362 = vmatmul.mubr.msk.f32.gmra.mrb[8].mxu1 %vm432_vm12, %v6502_v3 }
 0x361   : > { %5364 = vmatprep.mubr.msk.f32.mxu1 %vm432_vm12, %v6511_v60  ;;  %5452 = vmatprep.mubr.msk.f32.mxu0 %vm432_vm12, %v2612_v47 }
 0x363   : > { %v1764_v36 = vpop.trf.xlu0 }
 0x364   : > { %v2613_v54 = vpop.trf.xlu1  ;;  %5365 = vmatmul.mubr.msk.f32.gmra.mrb[10].mxu1 %vm432_vm12, %v6518_v12 }
 0x365   : > { %5367 = vmatprep.mubr.msk.f32.mxu1 %vm432_vm12, %v6525_v15  ;;  %5453 = vmatmul.mubr.msk.f32.gmra.mrb[2].mxu0 %vm432_vm12, %v2613_v54  ;;  %v6744_v54 = vld [vmem:[%s7072_s1 + $0x20] sm:$0xf] }
 0x367   : > { %v1765_v59 = vpop.trf.xlu0 }
 0x368   : > { %v2614_v62 = vpop.trf.xlu1  ;;  %5368 = vmatmul.mubr.msk.f32.gmra.mrb[12].mxu1 %vm432_vm12, %v6531_v19 }
 0x369   : > { %5370 = vmatprep.mubr.msk.f32.mxu1 %vm432_vm12, %v6537_v7  ;;  %5455 = vmatprep.mubr.msk.f32.mxu0 %vm432_vm12, %v2614_v62 }
 0x36b   : > { %v1766_v3 = vpop.trf.xlu0 }
 0x36c   : > { %v2615_v6 = vpop.trf.xlu1  ;;  %5371 = vmatmul.mubr.msk.f32.gmra.mrb[14].mxu1 %vm432_vm12, %v6548_v22 }
 0x36d   : > { %5373 = vmatprep.mubr.msk.f32.mxu1 %vm432_vm12, %v1759_v8  ;;  %5456 = vmatmul.mubr.msk.f32.gmra.mrb[4].mxu0 %vm432_vm12, %v2615_v6 }
 0x36f   : > { %v1767_v60 = vpop.trf.xlu0 }
 0x370   : > { %v2616_v11 = vpop.trf.xlu1  ;;  %5374 = vmatmul.mubr.msk.f32.gmra.mrb[16].mxu1 %vm432_vm12, %v1760_v29 }
 0x371   : > { %5376 = vmatprep.mubr.msk.f32.mxu1 %vm432_vm12, %v1761_v17  ;;  %5458 = vmatprep.mubr.msk.f32.mxu0 %vm432_vm12, %v2616_v11 }
 0x373   : > { %v1768_v12 = vpop.trf.xlu0 }
 0x374   : > { %v2617_v13 = vpop.trf.xlu1  ;;  %5377 = vmatmul.mubr.msk.f32.gmra.mrb[18].mxu1 %vm432_vm12, %v1762_v35 }
 0x375   : > { %5379 = vmatprep.mubr.msk.f32.mxu1 %vm432_vm12, %v1763_v43  ;;  %5459 = vmatmul.mubr.msk.f32.gmra.mrb[6].mxu0 %vm432_vm12, %v2617_v13 }
 0x377   : > { %v1769_v15 = vpop.trf.xlu0 }
 0x378   : > { %v2618_v18 = vpop.trf.xlu1  ;;  %5380 = vmatmul.mubr.msk.f32.gmra.mrb[20].mxu1 %vm432_vm12, %v1764_v36  ;;  %v2145_v36 = vsel %vm2143_vm13, %v6244_v49, %v6260_v2 }
 0x379   : > { %5382 = vmatprep.mubr.msk.f32.mxu1 %vm432_vm12, %v1765_v59  ;;  %5461 = vmatprep.mubr.msk.f32.mxu0 %vm432_vm12, %v2618_v18  ;;  %v3898_v18 = vld [vmem:[%s6195_s9 + $0x8] sm:$0xf] }
 0x37b   : > { %v1770_v19 = vpop.trf.xlu0 }
 0x37c   : > { %v2619_v20 = vpop.trf.xlu1  ;;  %5383 = vmatmul.mubr.msk.f32.gmra.mrb[22].mxu1 %vm432_vm12, %v1766_v3 }
 0x37d   : > { %5385 = vmatprep.mubr.msk.f32.mxu1 %vm432_vm12, %v1767_v60  ;;  %5462 = vmatmul.mubr.msk.f32.gmra.mrb[8].mxu0 %vm432_vm12, %v2619_v20 }
 0x37f   : > { %v1771_v7 = vpop.trf.xlu0 }
 0x380   : > { %v2620_v1 = vpop.trf.xlu1  ;;  %5386 = vmatmul.mubr.msk.f32.gmra.mrb[24].mxu1 %vm432_vm12, %v1768_v12 }
 0x381   : > { %5388 = vmatprep.mubr.msk.f32.mxu1 %vm432_vm12, %v1769_v15  ;;  %5464 = vmatprep.mubr.msk.f32.mxu0 %vm432_vm12, %v2620_v1 }
 0x383   : > { %v1772_v22 = vpop.trf.xlu0 }
 0x384   : > { %v2621_v5 = vpop.trf.xlu1  ;;  %5389 = vmatmul.mubr.msk.f32.gmra.mrb[26].mxu1 %vm432_vm12, %v1770_v19 }
 0x385   : > { %5391 = vmatprep.mubr.msk.f32.mxu1 %vm432_vm12, %v1771_v7  ;;  %5465 = vmatmul.mubr.msk.f32.gmra.mrb[10].mxu0 %vm432_vm12, %v2621_v5  ;;  %v3907_v7 = vmul.f32 %v3901_v10, %v3898_v18 }
 0x387   : > { %v1773_v24 = vpop.trf.xlu0  ;;  %3509 = vxpose.xlu0.b32.start.end [1/1] (short) %v3474_v23, 128 }
 0x388   : > { %v2622_v26 = vpop.trf.xlu1  ;;  %5392 = vmatmul.mubr.msk.f32.gmra.mrb[28].mxu1 %vm432_vm12, %v1772_v22 }
 0x389   : > { %5394 = vmatprep.mubr.msk.f32.mxu1 %vm432_vm12, %v1773_v24  ;;  %5467 = vmatprep.mubr.msk.f32.mxu0 %vm432_vm12, %v2622_v26 }
 0x38b   : > { %v1774_v28 = vpop.trf.xlu0 }
 0x38c   : > { %v2623_v30 = vpop.trf.xlu1  ;;  %5395 = vmatmul.mubr.msk.f32.gmra.mrb[30].mxu1 %vm432_vm12, %v1774_v28 }
 0x38d   : > { %5468 = vmatmul.mubr.msk.f32.gmra.mrb[12].mxu0 %vm432_vm12, %v2623_v30 }
 0x38f   : > { %v2642_v16 = vpop.trf.xlu0 }
 0x390   : > { %v2624_v34 = vpop.trf.xlu1  ;;  %3923 = vxpose.xlu1.b32.start.end [1/1] (short) %v3919_v21, 128 }
 0x391   : > { %5470 = vmatprep.mubr.msk.f32.mxu0 %vm432_vm12, %v2624_v34 }
 0x393   : > { %v2643_v37 = vpop.trf.xlu0 }
 0x394   : > { %v2625_v39 = vpop.trf.xlu1 }
 0x395   : > { %5471 = vmatmul.mubr.msk.f32.gmra.mrb[14].mxu0 %vm432_vm12, %v2625_v39 }
 0x396   : > { %5473 = vmatprep.mubr.msk.f32.mxu0 %vm432_vm12, %v2642_v16 }
 0x397   : > { %v2644_v41 = vpop.trf.xlu0 }
 0x398   : > { %v6685_v44 = vpop.trf.xlu1 }
 0x399   : > { %5474 = vmatmul.mubr.msk.f32.gmra.mrb[16].mxu0 %vm432_vm12, %v2643_v37 }
 0x39a   : > { %5476 = vmatprep.mubr.msk.f32.mxu0 %vm432_vm12, %v2644_v41 }
 0x39b   : > { %v2645_v46 = vpop.trf.xlu0 }
 0x39c   : > { %v6689_v25 = vpop.trf.xlu1 }
 0x39d   : > { %5477 = vmatmul.mubr.msk.f32.gmra.mrb[18].mxu0 %vm432_vm12, %v2645_v46 }
 0x39f   : > { %v2646_v51 = vpop.trf.xlu0 }
 0x3a0   : > { %v3058_v53 = vpop.trf.xlu1  ;;  %5479 = vmatprep.mubr.msk.f32.mxu0 %vm432_vm12, %v2646_v51 }
 0x3a3   : > { %v2647_v55 = vpop.trf.xlu0 }
 0x3a4   : > { %v3059_v42 = vpop.trf.xlu1  ;;  %5480 = vmatmul.mubr.msk.f32.gmra.mrb[20].mxu0 %vm432_vm12, %v2647_v55 }
 0x3a7   : > { %v2648_v27 = vpop.trf.xlu0 }
 0x3a8   : > { %v3060_v58 = vpop.trf.xlu1  ;;  %5482 = vmatprep.mubr.msk.f32.mxu0 %vm432_vm12, %v2648_v27 }
 0x3ab   : > { %v2649_v0 = vpop.trf.xlu0 }
 0x3ac   : > { %v3061_v31 = vpop.trf.xlu1  ;;  %5483 = vmatmul.mubr.msk.f32.gmra.mrb[22].mxu0 %vm432_vm12, %v2649_v0 }
 0x3af   : > { %v2650_v33 = vpop.trf.xlu0 }
 0x3b0   : > { %v3062_v40 = vpop.trf.xlu1  ;;  %5485 = vmatprep.mubr.msk.f32.mxu0 %vm432_vm12, %v2650_v33 }
 0x3b3   : > { %v2651_v45 = vpop.trf.xlu0 }
 0x3b4   : > { %v3063_v50 = vpop.trf.xlu1  ;;  %5486 = vmatmul.mubr.msk.f32.gmra.mrb[24].mxu0 %vm432_vm12, %v2651_v45 }
 0x3b7   : > { %v2652_v52 = vpop.trf.xlu0 }
 0x3b8   : > { %v3064_v56 = vpop.trf.xlu1  ;;  %5488 = vmatprep.mubr.msk.f32.mxu0 %vm432_vm12, %v2652_v52 }
 0x3bb   : > { %v2653_v61 = vpop.trf.xlu0 }
 0x3bc   : > { %v3065_v8 = vpop.trf.xlu1  ;;  %5489 = vmatmul.mubr.msk.f32.gmra.mrb[26].mxu0 %vm432_vm12, %v2653_v61 }
 0x3bf   : > { %v2654_v63 = vpop.trf.xlu0 }
 0x3c0   : > { %v3066_v29 = vpop.trf.xlu1  ;;  %5491 = vmatprep.mubr.msk.f32.mxu0 %vm432_vm12, %v2654_v63 }
 0x3c3   : > { %v2655_v4 = vpop.trf.xlu0 }
 0x3c4   : > { %v3067_v17 = vpop.trf.xlu1  ;;  %5492 = vmatmul.mubr.msk.f32.gmra.mrb[28].mxu0 %vm432_vm12, %v2655_v4 }
 0x3c7   : > { %v2656_v57 = vpop.trf.xlu0 }
 0x3c8   : > { %v3068_v35 = vpop.trf.xlu1  ;;  %5494 = vmatprep.mubr.msk.f32.mxu0 %vm432_vm12, %v2656_v57 }
 0x3cb   : > { %v2657_v38 = vpop.trf.xlu0 }
 0x3cc   : > { %v3069_v43 = vpop.trf.xlu1  ;;  %5495 = vmatmul.mubr.msk.f32.gmra.mrb[30].mxu0 %vm432_vm12, %v2657_v38 }
 0x3cd   : > { %5499 = vmatprep.mubr.msk.f32.mxu0 %vm432_vm12, %v6685_v44 }
 0x3cf   : > { %v3088_v47 = vpop.trf.xlu0 }
 0x3d0   : > { %v3070_v59 = vpop.trf.xlu1  ;;  %2180 = vxpose.xlu1.b32.start.end [1/1] (short) %v2145_v36, 128  ;;  %5500 = vmatmul.mubr.msk.f32.vlgmr.msra.gmra.mrb[0].mxu0 %vm432_vm12, %v6689_v25 }
 0x3d1   : > { %5502 = vmatprep.mubr.msk.f32.mxu0 %vm432_vm12, %v3058_v53  ;;  %5548 = vmatpush3.msk.msra.mxu0 %vm529_vm11, %v6674_v32 }
 0x3d2   : > { %5597 = vmatprep.subr.msk.mxu0 %vm529_vm11, %v6744_v54 }
 0x3d3   : > { %v3089_v62 = vpop.trf.xlu0 }
 0x3d4   : > { %v3071_v49 = vpop.trf.xlu1  ;;  %5503 = vmatmul.mubr.msk.f32.gmra.mrb[2].mxu0 %vm432_vm12, %v3059_v42 }
 0x3d5   : > { %5505 = vmatprep.mubr.msk.f32.mxu0 %vm432_vm12, %v3060_v58 }
 0x3d7   : > { %v3090_v2 = vpop.trf.xlu0 }
 0x3d8   : > { %v3493_v3 = vpop.trf.xlu1  ;;  %5506 = vmatmul.mubr.msk.f32.gmra.mrb[4].mxu0 %vm432_vm12, %v3061_v31 }
 0x3d9   : > { %5508 = vmatprep.mubr.msk.f32.mxu0 %vm432_vm12, %v3062_v40 }
 0x3db   : > { %v3091_v6 = vpop.trf.xlu0 }
 0x3dc   : > { %v3494_v60 = vpop.trf.xlu1  ;;  %5509 = vmatmul.mubr.msk.f32.gmra.mrb[6].mxu0 %vm432_vm12, %v3063_v50 }
 0x3dd   : > { %5511 = vmatprep.mubr.msk.f32.mxu0 %vm432_vm12, %v3064_v56 }
 0x3df   : > { %v3092_v11 = vpop.trf.xlu0 }
 0x3e0   : > { %v3495_v12 = vpop.trf.xlu1  ;;  %5512 = vmatmul.mubr.msk.f32.gmra.mrb[8].mxu0 %vm432_vm12, %v3065_v8 }
 0x3e1   : > { %5514 = vmatprep.mubr.msk.f32.mxu0 %vm432_vm12, %v3066_v29 }
 0x3e3   : > { %v3093_v13 = vpop.trf.xlu0 }
 0x3e4   : > { %v3496_v15 = vpop.trf.xlu1  ;;  %5515 = vmatmul.mubr.msk.f32.gmra.mrb[10].mxu0 %vm432_vm12, %v3067_v17 }
 0x3e5   : > { %5517 = vmatprep.mubr.msk.f32.mxu0 %vm432_vm12, %v3068_v35 }
 0x3e7   : > { %v3094_v19 = vpop.trf.xlu0 }
 0x3e8   : > { %v3497_v20 = vpop.trf.xlu1  ;;  %5518 = vmatmul.mubr.msk.f32.gmra.mrb[12].mxu0 %vm432_vm12, %v3069_v43 }
 0x3e9   : > { %5520 = vmatprep.mubr.msk.f32.mxu0 %vm432_vm12, %v3070_v59 }
 0x3eb   : > { %v3095_v1 = vpop.trf.xlu0 }
 0x3ec   : > { %v3498_v22 = vpop.trf.xlu1  ;;  %3916 = vrot.lane.b32.xlu0 %v3907_v7, %s6103_s8  ;;  %5521 = vmatmul.mubr.msk.f32.gmra.mrb[14].mxu0 %vm432_vm12, %v3071_v49 }
 0x3ed   : > { %5523 = vmatprep.mubr.msk.f32.mxu0 %vm432_vm12, %v3088_v47 }
 0x3ef   : > { %v3096_v5 = vpop.trf.xlu0 }
 0x3f0   : > { %v3499_v23 = vpop.trf.xlu1  ;;  %5524 = vmatmul.mubr.msk.f32.gmra.mrb[16].mxu0 %vm432_vm12, %v3089_v62 }
 0x3f1   : > { %5526 = vmatprep.mubr.msk.f32.mxu0 %vm432_vm12, %v3090_v2 }
 0x3f3   : > { %v3097_v24 = vpop.trf.xlu0 }
 0x3f4   : > { %v3500_v26 = vpop.trf.xlu1  ;;  %5527 = vmatmul.mubr.msk.f32.gmra.mrb[18].mxu0 %vm432_vm12, %v3091_v6 }
 0x3f5   : > { %5529 = vmatprep.mubr.msk.f32.mxu0 %vm432_vm12, %v3092_v11 }
 0x3f7   : > { %v3098_v9 = vpop.trf.xlu0 }
 0x3f8   : > { %v3501_v10 = vpop.trf.xlu1  ;;  %5530 = vmatmul.mubr.msk.f32.gmra.mrb[20].mxu0 %vm432_vm12, %v3093_v13 }
 0x3f9   : > { %5532 = vmatprep.mubr.msk.f32.mxu0 %vm432_vm12, %v3094_v19 }
 0x3fb   : > { %v3099_v28 = vpop.trf.xlu0 }
 0x3fc   : > { %v3502_v30 = vpop.trf.xlu1  ;;  %5533 = vmatmul.mubr.msk.f32.gmra.mrb[22].mxu0 %vm432_vm12, %v3095_v1 }
 0x3fd   : > { %5535 = vmatprep.mubr.msk.f32.mxu0 %vm432_vm12, %v3096_v5 }
 0x3ff   : > { %v3100_v32 = vpop.trf.xlu0 }
 0x400   : > { %v3503_v16 = vpop.trf.xlu1  ;;  %5536 = vmatmul.mubr.msk.f32.gmra.mrb[24].mxu0 %vm432_vm12, %v3097_v24 }
 0x401   : > { %5538 = vmatprep.mubr.msk.f32.mxu0 %vm432_vm12, %v3098_v9 }
 0x403   : > { %v3101_v21 = vpop.trf.xlu0 }
 0x404   : > { %v3504_v34 = vpop.trf.xlu1  ;;  %5539 = vmatmul.mubr.msk.f32.gmra.mrb[26].mxu0 %vm432_vm12, %v3099_v28 }
 0x405   : > { %5541 = vmatprep.mubr.msk.f32.mxu0 %vm432_vm12, %v3100_v32 }
 0x407   : > { %v3102_v37 = vpop.trf.xlu0 }
 0x408   : > { %v3505_v39 = vpop.trf.xlu1  ;;  %5542 = vmatmul.mubr.msk.f32.gmra.mrb[28].mxu0 %vm432_vm12, %v3101_v21 }
 0x409   : > { %5544 = vmatprep.mubr.msk.f32.mxu0 %vm432_vm12, %v3102_v37 }
 0x40b   : > { %v3103_v41 = vpop.trf.xlu0 }
 0x40c   : > { %v3506_v44 = vpop.trf.xlu1  ;;  %5545 = vmatmul.mubr.msk.f32.gmra.mrb[30].mxu0 %vm432_vm12, %v3103_v41 }
 0x40d   : > { %5549 = vmatprep.mubr.msk.f32.mxu0 %vm432_vm12, %v3493_v3 }
 0x40f   : > { %v3525_v46 = vpop.trf.xlu0 }
 0x410   : > { %v3507_v25 = vpop.trf.xlu1  ;;  %5550 = vmatmul.mubr.msk.f32.vlgmr.msra.gmra.mrb[0].mxu0 %vm432_vm12, %v3494_v60 }
 0x411   : > { %5552 = vmatprep.mubr.msk.f32.mxu0 %vm432_vm12, %v3495_v12  ;;  %5598 = vmatpush3.msk.msra.mxu0 %vm529_vm11, %v6744_v54 }
 0x413   : > { %v3526_v48 = vpop.trf.xlu0 }
 0x414   : > { %v3508_v51 = vpop.trf.xlu1  ;;  %5553 = vmatmul.mubr.msk.f32.gmra.mrb[2].mxu0 %vm432_vm12, %v3496_v15 }
 0x415   : > { %5555 = vmatprep.mubr.msk.f32.mxu0 %vm432_vm12, %v3497_v20 }
 0x417   : > { %v3527_v53 = vpop.trf.xlu0 }
 0x418   : > { %v6793_v55 = vpop.trf.xlu1  ;;  %5556 = vmatmul.mubr.msk.f32.gmra.mrb[4].mxu0 %vm432_vm12, %v3498_v22 }
 0x419   : > { %5558 = vmatprep.mubr.msk.f32.mxu0 %vm432_vm12, %v3499_v23 }
 0x41b   : > { %v3528_v42 = vpop.trf.xlu0 }
 0x41c   : > { %v6797_v27 = vpop.trf.xlu1  ;;  %5559 = vmatmul.mubr.msk.f32.gmra.mrb[6].mxu0 %vm432_vm12, %v3500_v26 }
 0x41d   : > { %5561 = vmatprep.mubr.msk.f32.mxu0 %vm432_vm12, %v3501_v10 }
 0x41f   : > { %v3529_v58 = vpop.trf.xlu0 }
 0x420   : > { %v6801_v0 = vpop.trf.xlu1  ;;  %5562 = vmatmul.mubr.msk.f32.gmra.mrb[8].mxu0 %vm432_vm12, %v3502_v30 }
 0x421   : > { %5564 = vmatprep.mubr.msk.f32.mxu0 %vm432_vm12, %v3503_v16 }
 0x423   : > { %v6805_v31 = vpop.f32.mrb[0].mxu1  ;;  %v3530_v33 = vpop.trf.xlu0 }
 0x424   : > { %v3942_v40 = vpop.trf.xlu1  ;;  %v6807_v45 = vpop.f32.mrb[1].mxu1  ;;  %5565 = vmatmul.mubr.msk.f32.gmra.mrb[10].mxu0 %vm432_vm12, %v3504_v34 }
 0x425   : > { %5567 = vmatprep.mubr.msk.f32.mxu0 %vm432_vm12, %v3505_v39 }
 0x427   : > { %v6811_v50 = vpop.f32.mrb[2].mxu1  ;;  %v3531_v52 = vpop.trf.xlu0 }
 0x428   : > { %v3943_v56 = vpop.trf.xlu1  ;;  %v6813_v61 = vpop.f32.mrb[3].mxu1  ;;  %5568 = vmatmul.mubr.msk.f32.gmra.mrb[12].mxu0 %vm432_vm12, %v3506_v44 }
 0x429   : > { %5570 = vmatprep.mubr.msk.f32.mxu0 %vm432_vm12, %v3507_v25 }
 0x42b   : > { %v6817_v8 = vpop.f32.mrb[4].mxu1  ;;  %v3532_v63 = vpop.trf.xlu0 }
 0x42c   : > { %v3944_v29 = vpop.trf.xlu1  ;;  %v6819_v4 = vpop.f32.mrb[5].mxu1  ;;  %5571 = vmatmul.mubr.msk.f32.gmra.mrb[14].mxu0 %vm432_vm12, %v3508_v51 }
 0x42d   : > { %5573 = vmatprep.mubr.msk.f32.mxu0 %vm432_vm12, %v3525_v46 }
 0x42f   : > { %v6823_v17 = vpop.f32.mrb[6].mxu1  ;;  %v3533_v57 = vpop.trf.xlu0 }
 0x430   : > { %v3945_v35 = vpop.trf.xlu1  ;;  %v6825_v38 = vpop.f32.mrb[7].mxu1  ;;  %5574 = vmatmul.mubr.msk.f32.gmra.mrb[16].mxu0 %vm432_vm12, %v3526_v48 }
 0x431   : > { %5576 = vmatprep.mubr.msk.f32.mxu0 %vm432_vm12, %v3527_v53 }
 0x433   : > { %v6829_v43 = vpop.f32.mrb[8].mxu1  ;;  %v3534_v47 = vpop.trf.xlu0 }
 0x434   : > { %v3946_v36 = vpop.trf.xlu1  ;;  %v6831_v54 = vpop.f32.mrb[9].mxu1  ;;  %5577 = vmatmul.mubr.msk.f32.gmra.mrb[18].mxu0 %vm432_vm12, %v3528_v42 }
 0x435   : > { %5579 = vmatprep.mubr.msk.f32.mxu0 %vm432_vm12, %v3529_v58  ;;  %v6105_v58 = vmov 0  }
 0x436   : > { %6008 = vset.pattern.permute.xlu1 %v6105_v58 }
 0x437   : > { %v6835_v59 = vpop.f32.mrb[10].mxu1  ;;  %v3535_v62 = vpop.trf.xlu0 }
 0x438   : > { %v3947_v49 = vpop.trf.xlu1  ;;  %v6837_v2 = vpop.f32.mrb[11].mxu1  ;;  %5580 = vmatmul.mubr.msk.f32.gmra.mrb[20].mxu0 %vm432_vm12, %v3530_v33 }
 0x439   : > { %5582 = vmatprep.mubr.msk.f32.mxu0 %vm432_vm12, %v3531_v52 }
 0x43b   : > { %v6841_v3 = vpop.f32.mrb[12].mxu1  ;;  %v3536_v6 = vpop.trf.xlu0 }
 0x43c   : > { %v3948_v60 = vpop.trf.xlu1  ;;  %v6843_v11 = vpop.f32.mrb[13].mxu1  ;;  %5583 = vmatmul.mubr.msk.f32.gmra.mrb[22].mxu0 %vm432_vm12, %v3532_v63 }
 0x43d   : > { %5585 = vmatprep.mubr.msk.f32.mxu0 %vm432_vm12, %v3533_v57 }
 0x43f   : > { %v6847_v12 = vpop.f32.mrb[14].mxu1  ;;  %v3537_v13 = vpop.trf.xlu0 }
 0x440   : > { %v3949_v15 = vpop.trf.xlu1  ;;  %v6849_v18 = vpop.f32.mrb[15].mxu1  ;;  %5586 = vmatmul.mubr.msk.f32.gmra.mrb[24].mxu0 %vm432_vm12, %v3534_v47 }
 0x441   : > { %5588 = vmatprep.mubr.msk.f32.mxu0 %vm432_vm12, %v3535_v62 }
 0x443   : > { %v3538_v19 = vpop.trf.xlu0 }
 0x444   : > { %v3950_v20 = vpop.trf.xlu1  ;;  %5589 = vmatmul.mubr.msk.f32.gmra.mrb[26].mxu0 %vm432_vm12, %v3536_v6  ;;  %v319_v6 = vld [vmem:[#allocation2 + $0x8] sm:$0xff] }
 0x445   : > { %5591 = vmatprep.mubr.msk.f32.mxu0 %vm432_vm12, %v3537_v13  ;;  %v5649_v13 = vadd.f32 %v6805_v31, %v319_v6  ;;  %v322_v31 = vld [vmem:[#allocation2 + $0x20] sm:$0xff] }
 0x447   : > { %v3539_v7 = vpop.trf.xlu0 }
 0x448   : > { %v3951_v1 = vpop.trf.xlu1  ;;  %5592 = vmatmul.mubr.msk.f32.gmra.mrb[28].mxu0 %vm432_vm12, %v3538_v19  ;;  %v321_v19 = vld [vmem:[#allocation2 + $0x18] sm:$0xff] }
 0x449   : > { %5594 = vmatprep.mubr.msk.f32.mxu0 %vm432_vm12, %v3539_v7  ;;  %v320_v7 = vld [vmem:[#allocation2 + $0x10] sm:$0xff] }
 0x44b   : > { %v3540_v22 = vpop.trf.xlu0 }
 0x44c   : > { %v3952_v5 = vpop.trf.xlu1  ;;  %5595 = vmatmul.mubr.msk.f32.gmra.mrb[30].mxu0 %vm432_vm12, %v3540_v22 }
 0x44d   : > { %5599 = vmatprep.mubr.msk.f32.mxu0 %vm432_vm12, %v6793_v55 }
 0x450   : > { %v3953_v23 = vpop.trf.xlu1  ;;  %5600 = vmatmul.mubr.msk.f32.vlgmr.msra.gmra.mrb[0].mxu0 %vm432_vm12, %v6797_v27  ;;  %v4443_v27 = vld [vmem:[%s7073_s2] sm:$0xff] }
 0x451   : > { %5602 = vmatprep.mubr.msk.f32.mxu0 %vm432_vm12, %v6801_v0  ;;  %4446 = vperm.xlu1 %6008, %v4443_v27  }
 0x454   : > { %v3954_v24 = vpop.trf.xlu1  ;;  %5603 = vmatmul.mubr.msk.f32.gmra.mrb[2].mxu0 %vm432_vm12, %v3942_v40 }
 0x455   : > { %5605 = vmatprep.mubr.msk.f32.mxu0 %vm432_vm12, %v3943_v56 }
 0x458   : > { %v2196_v26 = vpop.trf.xlu1  ;;  %5606 = vmatmul.mubr.msk.f32.gmra.mrb[4].mxu0 %vm432_vm12, %v3944_v29 }
 0x459   : > { %5608 = vmatprep.mubr.msk.f32.mxu0 %vm432_vm12, %v3945_v35  ;;  %5423 = vmatprep.mubr.msk.f32.mxu1 %vm432_vm12, %v2196_v26  ;;  %v323_v26 = vld [vmem:[#allocation2 + $0x28] sm:$0xff] }
 0x45c   : > { %v2197_v9 = vpop.trf.xlu1  ;;  %5609 = vmatmul.mubr.msk.f32.gmra.mrb[6].mxu0 %vm432_vm12, %v3946_v36 }
 0x45d   : > { %5424 = vmatmul.mubr.msk.f32.vlgmr.msra.gmra.mrb[16].mxu1 %vm432_vm12, %v2197_v9  ;;  %5611 = vmatprep.mubr.msk.f32.mxu0 %vm432_vm12, %v3947_v49 }
 0x45e   : > { %v3917_v10 = vpop.permute.xlu0 %3916 }
 0x45f   : > { %v3920_v28 = vsel %vm3918_vm14, %v6295_v14, %v3917_v10 }
 0x460   : > { %v2198_v30 = vpop.trf.xlu1  ;;  %5612 = vmatmul.mubr.msk.f32.gmra.mrb[8].mxu0 %vm432_vm12, %v3948_v60  ;;  %3955 = vxpose.xlu0.b32.start.end [1/1] (short) %v3920_v28, 128  ;;  %v318_v60 = vld [vmem:[#allocation2] sm:$0xff] }
 0x461   : > { %5614 = vmatprep.mubr.msk.f32.mxu0 %vm432_vm12, %v3949_v15  ;;  %5426 = vmatprep.mubr.msk.f32.mxu1 %vm432_vm12, %v2198_v30  ;;  %v5651_v15 = vadd.f32 %v6807_v45, %v318_v60  ;;  %v5657_v30 = vadd.f32 %v6817_v8, %v323_v26  ;;  %v327_v8 = vld [vmem:[#allocation2 + $0x48] sm:$0xff] }
 0x464   : > { %v2199_v32 = vpop.trf.xlu1  ;;  %5615 = vmatmul.mubr.msk.f32.gmra.mrb[10].mxu0 %vm432_vm12, %v3950_v20 }
 0x465   : > { %5427 = vmatmul.mubr.msk.f32.gmra.mrb[18].mxu1 %vm432_vm12, %v2199_v32  ;;  %5617 = vmatprep.mubr.msk.f32.mxu0 %vm432_vm12, %v3951_v1  ;;  %v5659_v32 = vadd.f32 %v6819_v4, %v322_v31  ;;  %v326_v4 = vld [vmem:[#allocation2 + $0x40] sm:$0xff] }
 0x468   : > { %v2200_v16 = vpop.trf.xlu1  ;;  %5618 = vmatmul.mubr.msk.f32.gmra.mrb[12].mxu0 %vm432_vm12, %v3952_v5 }
 0x469   : > { %5620 = vmatprep.mubr.msk.f32.mxu0 %vm432_vm12, %v3953_v23  ;;  %5429 = vmatprep.mubr.msk.f32.mxu1 %vm432_vm12, %v2200_v16  ;;  %v5653_v23 = vadd.f32 %v6811_v50, %v321_v19  ;;  %v325_v50 = vld [vmem:[#allocation2 + $0x38] sm:$0xff] }
 0x46c   : > { %v2201_v14 = vpop.trf.xlu1  ;;  %5621 = vmatmul.mubr.msk.f32.gmra.mrb[14].mxu0 %vm432_vm12, %v3954_v24  ;;  %v5655_v24 = vadd.f32 %v6813_v61, %v320_v7  ;;  %v324_v61 = vld [vmem:[#allocation2 + $0x30] sm:$0xff] }
 0x46d   : > { %5430 = vmatmul.mubr.msk.f32.gmra.mrb[20].mxu1 %vm432_vm12, %v2201_v14 }
 0x470   : > { %v2202_v21 = vpop.trf.xlu1 }
 0x471   : > { %5432 = vmatprep.mubr.msk.f32.mxu1 %vm432_vm12, %v2202_v21 }
 0x474   : > { %v2203_v34 = vpop.trf.xlu1 }
 0x475   : > { %5433 = vmatmul.mubr.msk.f32.gmra.mrb[22].mxu1 %vm432_vm12, %v2203_v34 }
 0x478   : > { %v2204_v37 = vpop.trf.xlu1 }
 0x479   : > { %5435 = vmatprep.mubr.msk.f32.mxu1 %vm432_vm12, %v2204_v37  ;;  %v5661_v37 = vadd.f32 %v6823_v17, %v325_v50  ;;  %v5667_v17 = vadd.f32 %v6831_v54, %v326_v4  ;;  %v330_v54 = vld [vmem:[#allocation2 + $0x60] sm:$0xff] }
 0x47c   : > { %v2205_v39 = vpop.trf.xlu1 }
 0x47d   : > { %5436 = vmatmul.mubr.msk.f32.gmra.mrb[24].mxu1 %vm432_vm12, %v2205_v39  ;;  %v5663_v39 = vadd.f32 %v6825_v38, %v324_v61  ;;  %v329_v38 = vld [vmem:[#allocation2 + $0x58] sm:$0xff]  ;;  %v334_v61 = vld [vmem:[#allocation2 + $0x80] sm:$0xff] }
 0x480   : > { %v2206_v41 = vpop.trf.xlu1 }
 0x481   : > { %5438 = vmatprep.mubr.msk.f32.mxu1 %vm432_vm12, %v2206_v41 }
 0x484   : > { %v2207_v44 = vpop.trf.xlu1 }
 0x485   : > { %5439 = vmatmul.mubr.msk.f32.gmra.mrb[26].mxu1 %vm432_vm12, %v2207_v44 }
 0x488   : > { %v2208_v46 = vpop.trf.xlu1 }
 0x489   : > { %5441 = vmatprep.mubr.msk.f32.mxu1 %vm432_vm12, %v2208_v46 }
 0x48c   : > { %v2209_v25 = vpop.trf.xlu1 }
 0x48d   : > { %5442 = vmatmul.mubr.msk.f32.gmra.mrb[28].mxu1 %vm432_vm12, %v2209_v25 }
 0x490   : > { %v2210_v48 = vpop.trf.xlu1 }
 0x491   : > { %5444 = vmatprep.mubr.msk.f32.mxu1 %vm432_vm12, %v2210_v48 }
 0x494   : > { %v2211_v51 = vpop.trf.xlu1 }
 0x495   : > { %5445 = vmatmul.mubr.msk.f32.gmra.mrb[30].mxu1 %vm432_vm12, %v2211_v51 }
 0x4e0   : > { %v3971_v53 = vpop.trf.xlu0 }
 0x4e1   : > { %5623 = vmatprep.mubr.msk.f32.mxu0 %vm432_vm12, %v3971_v53  ;;  %v5665_v53 = vadd.f32 %v6829_v43, %v327_v8  ;;  %v331_v43 = vld [vmem:[#allocation2 + $0x68] sm:$0xff]  ;;  %v337_v8 = vld [vmem:[#allocation2 + $0x98] sm:$0xff] }
 0x4e4   : > { %v3972_v55 = vpop.trf.xlu0 }
 0x4e5   : > { %5624 = vmatmul.mubr.msk.f32.gmra.mrb[16].mxu0 %vm432_vm12, %v3972_v55 }
 0x4e8   : > { %v3973_v42 = vpop.trf.xlu0 }
 0x4e9   : > { %5626 = vmatprep.mubr.msk.f32.mxu0 %vm432_vm12, %v3973_v42  ;;  %v328_v42 = vld [vmem:[#allocation2 + $0x50] sm:$0xff] }
 0x4ec   : > { %v3974_v0 = vpop.trf.xlu0 }
 0x4ed   : > { %5627 = vmatmul.mubr.msk.f32.gmra.mrb[18].mxu0 %vm432_vm12, %v3974_v0 }
 0x4f0   : > { %v3975_v33 = vpop.trf.xlu0 }
 0x4f1   : > { %5629 = vmatprep.mubr.msk.f32.mxu0 %vm432_vm12, %v3975_v33 }
 0x4f4   : > { %v3976_v40 = vpop.trf.xlu0 }
 0x4f5   : > { %5630 = vmatmul.mubr.msk.f32.gmra.mrb[20].mxu0 %vm432_vm12, %v3976_v40  ;;  %v5669_v40 = vadd.f32 %v6835_v59, %v329_v38  ;;  %v5675_v59 = vadd.f32 %v6843_v11, %v330_v54 }
 0x4f8   : > { %v3977_v52 = vpop.trf.xlu0 }
 0x4f9   : > { %5632 = vmatprep.mubr.msk.f32.mxu0 %vm432_vm12, %v3977_v52  ;;  %v5671_v52 = vadd.f32 %v6837_v2, %v328_v42  ;;  %v333_v2 = vld [vmem:[#allocation2 + $0x78] sm:$0xff] }
 0x4fc   : > { %v3978_v56 = vpop.trf.xlu0 }
 0x4fd   : > { %5633 = vmatmul.mubr.msk.f32.gmra.mrb[22].mxu0 %vm432_vm12, %v3978_v56 }
 0x500   : > { %v3979_v63 = vpop.trf.xlu0 }
 0x501   : > { %5635 = vmatprep.mubr.msk.f32.mxu0 %vm432_vm12, %v3979_v63 }
 0x504   : > { %v3980_v29 = vpop.trf.xlu0 }
 0x505   : > { %5636 = vmatmul.mubr.msk.f32.gmra.mrb[24].mxu0 %vm432_vm12, %v3980_v29 }
 0x508   : > { %v3981_v57 = vpop.trf.xlu0 }
 0x509   : > { %5638 = vmatprep.mubr.msk.f32.mxu0 %vm432_vm12, %v3981_v57 }
 0x50c   : > { %v3982_v35 = vpop.trf.xlu0 }
 0x50d   : > { %5639 = vmatmul.mubr.msk.f32.gmra.mrb[26].mxu0 %vm432_vm12, %v3982_v35 }
 0x510   : > { %v3983_v47 = vpop.trf.xlu0 }
 0x511   : > { %5641 = vmatprep.mubr.msk.f32.mxu0 %vm432_vm12, %v3983_v47 }
 0x514   : > { %v3984_v36 = vpop.trf.xlu0 }
 0x515   : > { %5642 = vmatmul.mubr.msk.f32.gmra.mrb[28].mxu0 %vm432_vm12, %v3984_v36  ;;  %v5673_v36 = vadd.f32 %v6841_v3, %v331_v43 }
 0x518   : > { %v3985_v62 = vpop.trf.xlu0 }
 0x519   : > { %5644 = vmatprep.mubr.msk.f32.mxu0 %vm432_vm12, %v3985_v62 }
 0x51c   : > { %v3986_v49 = vpop.trf.xlu0 }
 0x51d   : > { %5645 = vmatmul.mubr.msk.f32.gmra.mrb[30].mxu0 %vm432_vm12, %v3986_v49  ;;  %v332_v49 = vld [vmem:[#allocation2 + $0x70] sm:$0xff] }
 0x51e   : > { %v5679_v19 = vadd.f32 %v6849_v18, %v332_v49 }
 0x523   : > { %v5601_v20 = vpop.f32.mrb[0].mxu0 }
 0x524   : > { %v5650_v1 = vadd.f32 %v5649_v13, %v5601_v20  ;;  %v4152_v22 = vpop.f32.mrb[1].mxu0 }
 0x525   : > { %v5652_v5 = vadd.f32 %v5651_v15, %v4152_v22  ;;  %v5677_v15 = vadd.f32 %v6847_v12, %v333_v2 }
 0x526   : > { %4345 = vst.msk [vmem:[#allocation2 + $0x8] sm:$0xff] %vm285_vm15, %v5650_v1 }
 0x527   : > { %4344 = vst.msk [vmem:[#allocation2] sm:$0xff] %vm285_vm15, %v5652_v5  ;;  %v5604_v9 = vpop.f32.mrb[2].mxu0  ;;  %4379 = vxpose.xlu0.b32.start [1/16] (narrow) %v5652_v5, 8 }
 0x528   : > { %v5654_v10 = vadd.f32 %v5653_v23, %v5604_v9  ;;  %v4162_v45 = vpop.f32.mrb[3].mxu0 }
 0x529   : > { %v5656_v28 = vadd.f32 %v5655_v24, %v4162_v45 }
 0x52a   : > { %4347 = vst.msk [vmem:[#allocation2 + $0x18] sm:$0xff] %vm285_vm15, %v5654_v10 }
 0x52b   : > { %4346 = vst.msk [vmem:[#allocation2 + $0x10] sm:$0xff] %vm285_vm15, %v5656_v28  ;;  %v5607_v16 = vpop.f32.mrb[4].mxu0  ;;  %4380 = vxpose.xlu0.b32.cont [2/16] (narrow) %v5650_v1, 8 }
 0x52c   : > { %v5658_v14 = vadd.f32 %v5657_v30, %v5607_v16  ;;  %v4172_v21 = vpop.f32.mrb[5].mxu0  ;;  %v335_v16 = vld [vmem:[#allocation2 + $0x88] sm:$0xff] }
 0x52d   : > { %v5660_v34 = vadd.f32 %v5659_v32, %v4172_v21 }
 0x52e   : > { %4349 = vst.msk [vmem:[#allocation2 + $0x28] sm:$0xff] %vm285_vm15, %v5658_v14 }
 0x52f   : > { %4348 = vst.msk [vmem:[#allocation2 + $0x20] sm:$0xff] %vm285_vm15, %v5660_v34  ;;  %v5610_v41 = vpop.f32.mrb[6].mxu0  ;;  %4381 = vxpose.xlu0.b32.cont [3/16] (narrow) %v5656_v28, 8  ;;  %v6977_v28 = vpop.permute.xlu1 %4446 }
 0x530   : > { %v5662_v44 = vadd.f32 %v5661_v37, %v5610_v41  ;;  %v6929_v46 = vpop.f32.mrb[16].mxu1  ;;  %v4182_v25 = vpop.f32.mrb[7].mxu0  ;;  %v336_v41 = vld [vmem:[#allocation2 + $0x90] sm:$0xff] }
 0x531   : > { %v5664_v48 = vadd.f32 %v5663_v39, %v4182_v25  ;;  %v6931_v51 = vpop.f32.mrb[17].mxu1 }
 0x532   : > { %4351 = vst.msk [vmem:[#allocation2 + $0x38] sm:$0xff] %vm285_vm15, %v5662_v44  ;;  %v5683_v21 = vadd.f32 %v6931_v51, %v334_v61 }
 0x533   : > { %4350 = vst.msk [vmem:[#allocation2 + $0x30] sm:$0xff] %vm285_vm15, %v5664_v48  ;;  %v5613_v55 = vpop.f32.mrb[8].mxu0  ;;  %4382 = vxpose.xlu0.b32.cont [4/16] (narrow) %v5654_v10, 8 }
 0x534   : > { %v5666_v27 = vadd.f32 %v5665_v53, %v5613_v55  ;;  %v4192_v0 = vpop.f32.mrb[9].mxu0  ;;  %v339_v53 = vld [vmem:[#allocation2 + $0xa8] sm:$0xff] }
 0x535   : > { %v5668_v33 = vadd.f32 %v5667_v17, %v4192_v0  ;;  %v338_v17 = vld [vmem:[#allocation2 + $0xa0] sm:$0xff] }
 0x536   : > { %4353 = vst.msk [vmem:[#allocation2 + $0x48] sm:$0xff] %vm285_vm15, %v5666_v27 }
 0x537   : > { %4352 = vst.msk [vmem:[#allocation2 + $0x40] sm:$0xff] %vm285_vm15, %v5668_v33  ;;  %v5616_v56 = vpop.f32.mrb[10].mxu0  ;;  %4383 = vxpose.xlu0.b32.cont [5/16] (narrow) %v5660_v34, 8 }
 0x538   : > { %v5670_v63 = vadd.f32 %v5669_v40, %v5616_v56  ;;  %v6941_v29 = vpop.f32.mrb[18].mxu1  ;;  %v4202_v57 = vpop.f32.mrb[11].mxu0  ;;  %v341_v40 = vld [vmem:[#allocation2 + $0xb8] sm:$0xff] }
 0x539   : > { %v5672_v35 = vadd.f32 %v5671_v52, %v4202_v57  ;;  %v6943_v47 = vpop.f32.mrb[19].mxu1  ;;  %v5685_v4 = vadd.f32 %v6941_v29, %v337_v8  ;;  %v340_v52 = vld [vmem:[#allocation2 + $0xb0] sm:$0xff] }
 0x53a   : > { %4355 = vst.msk [vmem:[#allocation2 + $0x58] sm:$0xff] %vm285_vm15, %v5670_v63 }
 0x53b   : > { %4354 = vst.msk [vmem:[#allocation2 + $0x50] sm:$0xff] %vm285_vm15, %v5672_v35  ;;  %v5619_v62 = vpop.f32.mrb[12].mxu0  ;;  %4384 = vxpose.xlu0.b32.cont [6/16] (narrow) %v5658_v14, 8  ;;  %v5681_v14 = vadd.f32 %v6929_v46, %v335_v16 }
 0x53c   : > { %v5674_v6 = vadd.f32 %v5673_v36, %v5619_v62  ;;  %v4212_v60 = vpop.f32.mrb[13].mxu0 }
 0x53d   : > { %v5676_v13 = vadd.f32 %v5675_v59, %v4212_v60  ;;  %v345_v60 = vld [vmem:[#allocation2 + $0xd8] sm:$0xff] }
 0x53e   : > { %4357 = vst.msk [vmem:[#allocation2 + $0x68] sm:$0xff] %vm285_vm15, %v5674_v6 }
 0x53f   : > { %4356 = vst.msk [vmem:[#allocation2 + $0x60] sm:$0xff] %vm285_vm15, %v5676_v13  ;;  %v5622_v3 = vpop.f32.mrb[14].mxu0  ;;  %4385 = vxpose.xlu0.b32.cont [7/16] (narrow) %v5664_v48, 8 }
 0x540   : > { %v5678_v11 = vadd.f32 %v5677_v15, %v5622_v3  ;;  %v5431_v20 = vpop.f32.mrb[20].mxu1  ;;  %v4222_v7 = vpop.f32.mrb[15].mxu0 }
 0x541   : > { %v5680_v1 = vadd.f32 %v5679_v19, %v4222_v7  ;;  %v2477_v22 = vpop.f32.mrb[21].mxu1  ;;  %v5689_v38 = vadd.f32 %v5431_v20, %v339_v53 }
 0x542   : > { %4359 = vst.msk [vmem:[#allocation2 + $0x78] sm:$0xff] %vm285_vm15, %v5678_v11  ;;  %v5691_v55 = vadd.f32 %v2477_v22, %v338_v17  ;;  %v346_v22 = vld [vmem:[#allocation2 + $0xe0] sm:$0xff] }
 0x543   : > { %4358 = vst.msk [vmem:[#allocation2 + $0x70] sm:$0xff] %vm285_vm15, %v5680_v1  ;;  %4386 = vxpose.xlu0.b32.cont [8/16] (narrow) %v5662_v44, 8  ;;  %v5687_v44 = vadd.f32 %v6943_v47, %v336_v41  ;;  %v342_v47 = vld [vmem:[#allocation2 + $0xc0] sm:$0xff] }
 0x547   : > { %4387 = vxpose.xlu0.b32.cont [9/16] (narrow) %v5668_v33, 8 }
 0x548   : > { %v6955_v12 = vpop.f32.mrb[22].mxu1 }
 0x549   : > { %v6957_v5 = vpop.f32.mrb[23].mxu1  ;;  %v5693_v43 = vadd.f32 %v6955_v12, %v341_v40 }
 0x54a   : > { %v5695_v56 = vadd.f32 %v6957_v5, %v340_v52 }
 0x54b   : > { %4388 = vxpose.xlu0.b32.cont [10/16] (narrow) %v5666_v27, 8 }
 0x54f   : > { %4389 = vxpose.xlu0.b32.cont [11/16] (narrow) %v5672_v35, 8  ;;  %v343_v35 = vld [vmem:[#allocation2 + $0xc8] sm:$0xff] }
 0x550   : > { %v6959_v18 = vpop.f32.mrb[24].mxu1 }
 0x551   : > { %v6961_v23 = vpop.f32.mrb[25].mxu1  ;;  %v5697_v36 = vadd.f32 %v6959_v18, %v343_v35 }
 0x552   : > { %v5699_v59 = vadd.f32 %v6961_v23, %v342_v47 }
 0x553   : > { %4390 = vxpose.xlu0.b32.cont [12/16] (narrow) %v5670_v63, 8 }
 0x557   : > { %4391 = vxpose.xlu0.b32.cont [13/16] (narrow) %v5676_v13, 8  ;;  %v344_v13 = vld [vmem:[#allocation2 + $0xd0] sm:$0xff] }
 0x558   : > { %v6963_v24 = vpop.f32.mrb[26].mxu1 }
 0x559   : > { %v6965_v26 = vpop.f32.mrb[27].mxu1  ;;  %v5701_v15 = vadd.f32 %v6963_v24, %v345_v60 }
 0x55a   : > { %v5703_v19 = vadd.f32 %v6965_v26, %v344_v13 }
 0x55b   : > { %4392 = vxpose.xlu0.b32.cont [14/16] (narrow) %v5674_v6, 8 }
 0x55f   : > { %4393 = vxpose.xlu0.b32.cont [15/16] (narrow) %v5680_v1, 8  ;;  %v347_v1 = vld [vmem:[#allocation2 + $0xe8] sm:$0xff] }
 0x560   : > { %v6967_v9 = vpop.f32.mrb[28].mxu1 }
 0x561   : > { %v6969_v31 = vpop.f32.mrb[29].mxu1  ;;  %v5705_v12 = vadd.f32 %v6967_v9, %v347_v1 }
 0x562   : > { %v5707_v5 = vadd.f32 %v6969_v31, %v346_v22 }
 0x563   : > { %4394 = vxpose.xlu0.b32.end [16/16] (narrow) %v5678_v11, 8 }
 0x568   : > { %v6971_v10 = vpop.f32.mrb[30].mxu1 }
 0x569   : > { %v6973_v45 = vpop.f32.mrb[31].mxu1 }
 0x58c   : > { %6009 = vset.pattern.permute.xlu0 %v6105_v58 }
 0x5a7   : > { %v4395_v30 = vpop.trf.xlu0 }
 0x5a8   : > { %v4449_v32 = vadd.f32 %v6977_v28, %v4395_v30  ;;  %v349_v30 = vld [vmem:[#allocation2 + $0xf8] sm:$0xff] }
 0x5aa   : > { %v4451_v50 = vmax.f32 %v4449_v32, 0.0  ;;  %v348_v32 = vld [vmem:[#allocation2 + $0xf0] sm:$0xff] }
 0x5ab   : > { %v5711_v9 = vadd.f32 %v6973_v45, %v348_v32 }
 0x5ac   : > { %4453 = vst [vmem:[%s6982_s22] sm:$0xff] %v4451_v50  ;;  %v5709_v50 = vadd.f32 %v6971_v10, %v349_v30 }
 0x5b8   : > { %v5625_v58 = vpop.f32.mrb[16].mxu0 }
 0x5b9   : > { %v5682_v34 = vadd.f32 %v5681_v14, %v5625_v58  ;;  %v4232_v37 = vpop.f32.mrb[17].mxu0 }
 0x5ba   : > { %v5684_v39 = vadd.f32 %v5683_v21, %v4232_v37 }
 0x5bb   : > { %4361 = vst.msk [vmem:[#allocation2 + $0x88] sm:$0xff] %vm285_vm15, %v5682_v34 }
 0x5bc   : > { %4360 = vst.msk [vmem:[#allocation2 + $0x80] sm:$0xff] %vm285_vm15, %v5684_v39  ;;  %4411 = vxpose.xlu1.b32.start [1/16] (narrow) %v5684_v39, 8 }
 0x5c0   : > { %4412 = vxpose.xlu1.b32.cont [2/16] (narrow) %v5682_v34, 8  ;;  %v5628_v25 = vpop.f32.mrb[18].mxu0 }
 0x5c1   : > { %v5686_v46 = vadd.f32 %v5685_v4, %v5628_v25  ;;  %v4242_v48 = vpop.f32.mrb[19].mxu0 }
 0x5c2   : > { %v5688_v51 = vadd.f32 %v5687_v44, %v4242_v48 }
 0x5c3   : > { %4363 = vst.msk [vmem:[#allocation2 + $0x98] sm:$0xff] %vm285_vm15, %v5686_v46 }
 0x5c4   : > { %4362 = vst.msk [vmem:[#allocation2 + $0x90] sm:$0xff] %vm285_vm15, %v5688_v51  ;;  %4413 = vxpose.xlu1.b32.cont [3/16] (narrow) %v5688_v51, 8 }
 0x5c8   : > { %4414 = vxpose.xlu1.b32.cont [4/16] (narrow) %v5686_v46, 8  ;;  %v5631_v42 = vpop.f32.mrb[20].mxu0 }
 0x5c9   : > { %v5690_v27 = vadd.f32 %v5689_v38, %v5631_v42  ;;  %v4252_v0 = vpop.f32.mrb[21].mxu0 }
 0x5ca   : > { %v5692_v33 = vadd.f32 %v5691_v55, %v4252_v0 }
 0x5cb   : > { %4365 = vst.msk [vmem:[#allocation2 + $0xa8] sm:$0xff] %vm285_vm15, %v5690_v27 }
 0x5cc   : > { %4364 = vst.msk [vmem:[#allocation2 + $0xa0] sm:$0xff] %vm285_vm15, %v5692_v33  ;;  %4415 = vxpose.xlu1.b32.cont [5/16] (narrow) %v5692_v33, 8 }
 0x5d0   : > { %4416 = vxpose.xlu1.b32.cont [6/16] (narrow) %v5690_v27, 8  ;;  %v5634_v54 = vpop.f32.mrb[22].mxu0 }
 0x5d1   : > { %v5694_v63 = vadd.f32 %v5693_v43, %v5634_v54  ;;  %v4262_v29 = vpop.f32.mrb[23].mxu0 }
 0x5d2   : > { %v5696_v57 = vadd.f32 %v5695_v56, %v4262_v29 }
 0x5d3   : > { %4367 = vst.msk [vmem:[#allocation2 + $0xb8] sm:$0xff] %vm285_vm15, %v5694_v63 }
 0x5d4   : > { %4366 = vst.msk [vmem:[#allocation2 + $0xb0] sm:$0xff] %vm285_vm15, %v5696_v57  ;;  %4417 = vxpose.xlu1.b32.cont [7/16] (narrow) %v5696_v57, 8 }
 0x5d8   : > { %4418 = vxpose.xlu1.b32.cont [8/16] (narrow) %v5694_v63, 8  ;;  %v5637_v2 = vpop.f32.mrb[24].mxu0 }
 0x5d9   : > { %v5698_v62 = vadd.f32 %v5697_v36, %v5637_v2  ;;  %v4272_v49 = vpop.f32.mrb[25].mxu0 }
 0x5da   : > { %v5700_v6 = vadd.f32 %v5699_v59, %v4272_v49 }
 0x5db   : > { %4369 = vst.msk [vmem:[#allocation2 + $0xc8] sm:$0xff] %vm285_vm15, %v5698_v62 }
 0x5dc   : > { %4368 = vst.msk [vmem:[#allocation2 + $0xc0] sm:$0xff] %vm285_vm15, %v5700_v6  ;;  %4419 = vxpose.xlu1.b32.cont [9/16] (narrow) %v5700_v6, 8 }
 0x5e0   : > { %4420 = vxpose.xlu1.b32.cont [10/16] (narrow) %v5698_v62, 8  ;;  %v5640_v3 = vpop.f32.mrb[26].mxu0 }
 0x5e1   : > { %v5702_v11 = vadd.f32 %v5701_v15, %v5640_v3  ;;  %v4282_v20 = vpop.f32.mrb[27].mxu0 }
 0x5e2   : > { %v5704_v7 = vadd.f32 %v5703_v19, %v4282_v20 }
 0x5e3   : > { %4371 = vst.msk [vmem:[#allocation2 + $0xd8] sm:$0xff] %vm285_vm15, %v5702_v11 }
 0x5e4   : > { %4370 = vst.msk [vmem:[#allocation2 + $0xd0] sm:$0xff] %vm285_vm15, %v5704_v7  ;;  %4421 = vxpose.xlu1.b32.cont [11/16] (narrow) %v5704_v7, 8 }
 0x5e8   : > { %4422 = vxpose.xlu1.b32.cont [12/16] (narrow) %v5702_v11, 8  ;;  %v5643_v18 = vpop.f32.mrb[28].mxu0 }
 0x5e9   : > { %v5706_v23 = vadd.f32 %v5705_v12, %v5643_v18  ;;  %v4292_v24 = vpop.f32.mrb[29].mxu0 }
 0x5ea   : > { %v5708_v26 = vadd.f32 %v5707_v5, %v4292_v24 }
 0x5eb   : > { %4373 = vst.msk [vmem:[#allocation2 + $0xe8] sm:$0xff] %vm285_vm15, %v5706_v23 }
 0x5ec   : > { %4372 = vst.msk [vmem:[#allocation2 + $0xe0] sm:$0xff] %vm285_vm15, %v5708_v26  ;;  %4423 = vxpose.xlu1.b32.cont [13/16] (narrow) %v5708_v26, 8 }
 0x5f0   : > { %4424 = vxpose.xlu1.b32.cont [14/16] (narrow) %v5706_v23, 8  ;;  %v5646_v31 = vpop.f32.mrb[30].mxu0 }
 0x5f1   : > { %v5710_v16 = vadd.f32 %v5709_v50, %v5646_v31  ;;  %v4302_v61 = vpop.f32.mrb[31].mxu0 }
 0x5f2   : > { %v5712_v14 = vadd.f32 %v5711_v9, %v4302_v61 }
 0x5f3   : > { %4375 = vst.msk [vmem:[#allocation2 + $0xf8] sm:$0xff] %vm285_vm15, %v5710_v16 }
 0x5f4   : > { %4374 = vst.msk [vmem:[#allocation2 + $0xf0] sm:$0xff] %vm285_vm15, %v5712_v14  ;;  %4425 = vxpose.xlu1.b32.cont [15/16] (narrow) %v5712_v14, 8 }
 0x5f8   : > { %4426 = vxpose.xlu1.b32.end [16/16] (narrow) %v5710_v16, 8 }
 0x63c   : > { %v4427_v21 = vpop.trf.xlu1 }
 0x63d   : > { %v4450_v10 = vadd.f32 %v6977_v28, %v4427_v21 }
 0x63f   : > { %v4452_v45 = vmax.f32 %v4450_v10, 0.0 }
 0x641   : > { %4454 = vst [vmem:[%s6982_s22 + $0x8] sm:$0xff] %v4452_v45 }
 0x642   : > { %6024 = shalt.err (!%p6021_p5)
}
 0x643   : > { %s6025_s12 = scalar_lea.hbm %s7021_s5, 256  ;;  %s6029_s8 = scalar_lea.hbm %s7075_s4, 512 }
 0x644   : > { %p6026_p6 = scmp.ne.s32.totalorder %s7021_s5, %s6025_s12  ;;  %p6030_p10 = scmp.lt.u32.totalorder %s7021_s5, %s7075_s4 }
 0x645   : > { %p6031_p11 = scmp.lt.u32.totalorder %s6029_s8, %s6025_s12  ;;  %p6033_p13 = scmp.lt.u32.totalorder %s6025_s12, %s7021_s5 }
 0x646   : > { %p6027_p7 = pnand %p6026_p6, %p6172_p4 }
 0x647   : > { %p6032_p12 = por %p6031_p11, %p6030_p10 }
 0x648   : > { %p6028_p9 = pneg %p6027_p7 }
 0x649   : > { %p6034_p0 = por %p6033_p13, %p6032_p12 }
 0x64b   : > { %p6035_p1 = pnand %p6034_p0, %p6028_p9 }
 0x64d   : > { %6038 = shalt.err (!%p6035_p1)
}
 0x64e   : > { %5938 = dma.vmem_to_hbm [thread:$0]  (%p6172_p4), %s7023_s26, 256, %s7021_s5, %s4456_s6  }
 0x64f PF: > { %p5944_p2 = scmp.ge.s32.totalorder %s6089_s20, 2  ;;  %s4484_s22 = sand.u32 1, %s6069_s15  }
 0x650   : > { %s4485_s24 = scalar_lea.sflag [#allocation4], %s4484_s22 }
 0x651   : > { %p5941_p3 = pnand %p5944_p2, %p6179_p8 }
 0x653   : > { %6064 = dma.done.wait (!%p5941_p3), %s4485_s24, 256  }
 0x654   : > { %6066 = vsyncadd (!%p5941_p3), %s4485_s24, 4294967040  ;;  %s17_s20 = sadd.s32 1, %s6089_s20   ;;  %s7078_s15 = smov %s6073_s16 }
 0x655   : > { %p14_p5 = scmp.ge.s32.totalorder %s17_s20, 4   ;;  %s7079_s16 = smov %s6077_s17 }
 0x656   : > { %s7080_s17 = smov %s6185_s28  ;;  %s7081_s18 = smov %s6085_s19 }
 0x657   : > { %s7082_s19 = smov %s7084_s23  ;;  %16 = sbr.rel (!%p14_p5) target bundleno = 4 (0x4), region = 86 }
 0x65e   :  { %4490 = vsyncpa [#allocation4], 1 }
 0x65f   :  { %4492 = vsyncpa [#allocation4 + $0x1], 1 }

</bundles_post_ra>
